<compile_context>
chip_gen: v6e
topology: v6e:2x2x1
jax: 0.10.0
libtpu: 0.0.40
codegen_flags: <defaults>
</compile_context>

<pallas_src>
import math

import jax
import jax.numpy as jnp
from jax.experimental import pallas as pl
from jax.experimental.pallas import tpu as pltpu


_VMEM = pl.BlockSpec(memory_space=pltpu.MemorySpace.VMEM)


def _round_up(n, m):
    return ((n + m - 1) // m) * m


def _row_tile(n):
    return 128 if n >= 128 else 8


# ----------------------------------------------------------------------------
# Pallas kernels
# ----------------------------------------------------------------------------
def _edge_mlp_kernel(ea_ref, w1_ref, b1_ref, w2_ref, b2_ref, o_ref):
    # relu(relu(ea @ W1 + b1) @ W2 + b2); the [E,64] intermediate never leaves VMEM.
    h = jnp.dot(ea_ref[...], w1_ref[...], preferred_element_type=jnp.float32)
    h = jnp.maximum(h + b1_ref[...], 0.0).astype(jnp.bfloat16)
    z = jnp.dot(h, w2_ref[...], preferred_element_type=jnp.float32)
    o_ref[...] = jnp.maximum(z + b2_ref[...], 0.0)


def _gine_nn_kernel(h_ref, w_ref, b_ref, o_ref):
    # Linear(1,128): outer-product broadcast on the VPU, then ReLU. Lane-dense out.
    z = h_ref[...] * w_ref[...] + b_ref[...]
    o_ref[...] = jnp.maximum(z, 0.0).astype(o_ref.dtype)


def _matmul_kernel(x_ref, w_ref, o_ref):
    o_ref[...] = jnp.dot(x_ref[...], w_ref[...],
                         preferred_element_type=jnp.float32).astype(o_ref.dtype)


def _gcn_agg_kernel(a_ref, hw_ref, b_ref, o_ref):
    # relu(A_rowtile @ (XW) + b); row axis is grid-parallel.
    acc = jnp.dot(a_ref[...], hw_ref[...], preferred_element_type=jnp.float32)
    o_ref[...] = jnp.maximum(acc + b_ref[...], 0.0).astype(o_ref.dtype)


def _gat_attn_kernel(hg_ref, conn_ref, asrc_ref, adst_ref, b_ref, o_ref):
    # Fused leaky_relu + connectivity mask + softmax + alpha @ (Wx) + bias + relu.
    logits = adst_ref[...] + asrc_ref[...]                      # [TM, Np]
    logits = jnp.where(logits > 0, logits, 0.2 * logits)        # leaky_relu(0.2)
    conn = conn_ref[...].astype(jnp.float32)
    logits = jnp.where(conn > 0.5, logits, jnp.float32(-1e30))
    m = jnp.max(logits, axis=-1, keepdims=True)
    p = jnp.exp(logits - m)
    denom = jnp.sum(p, axis=-1, keepdims=True)
    alpha = (p * pl.reciprocal(denom, approx=True)).astype(jnp.bfloat16)
    out = jnp.dot(alpha, hg_ref[...], preferred_element_type=jnp.float32)
    o_ref[...] = jnp.maximum(out + b_ref[...], 0.0).astype(o_ref.dtype)


def _head_kernel(y_ref, w1_ref, b1_ref, w2_ref, b2_ref, w3_ref, b3_ref, o_ref):
    h = jnp.dot(y_ref[...], w1_ref[...], preferred_element_type=jnp.float32)
    h = jnp.maximum(h + b1_ref[...], 0.0).astype(jnp.bfloat16)
    # dropout(p=0.5): inference mode -> identity
    h = jnp.dot(h, w2_ref[...], preferred_element_type=jnp.float32)
    h = jnp.maximum(h + b2_ref[...], 0.0).astype(jnp.bfloat16)
    z = jnp.dot(h, w3_ref[...], preferred_element_type=jnp.float32) + b3_ref[...]
    lane = jax.lax.broadcasted_iota(jnp.int32, z.shape, 1)
    valid = lane < 4                                            # 4 real classes, rest padding
    zm = jnp.where(valid, z, jnp.float32(-1e30))
    m = jnp.max(zm, axis=-1, keepdims=True)
    s = zm - m
    lse = jnp.log(jnp.sum(jnp.where(valid, jnp.exp(s), 0.0), axis=-1, keepdims=True))
    o_ref[...] = jnp.where(valid, s - lse, 0.0)


# ----------------------------------------------------------------------------
# Kernel wrappers
# ----------------------------------------------------------------------------
def edge_mlp(edge_attr, p):
    E = edge_attr.shape[0]
    ea = jnp.pad(edge_attr, ((0, 0), (0, 128 - edge_attr.shape[1]))).astype(jnp.bfloat16)
    return pl.pallas_call(
        _edge_mlp_kernel,
        out_shape=jax.ShapeDtypeStruct((E, 1), jnp.float32),
        in_specs=[_VMEM] * 5,
        out_specs=_VMEM,
    )(ea, p["dec1_w"], p["dec1_b"], p["dec2_w"], p["dec2_b"])


def gine_nn(h, p):
    N = h.shape[0]
    return pl.pallas_call(
        _gine_nn_kernel,
        out_shape=jax.ShapeDtypeStruct((N, 128), jnp.bfloat16),
        in_specs=[_VMEM] * 3,
        out_specs=_VMEM,
    )(h.astype(jnp.float32), p["line_w"], p["line_b"])


def matmul_128(x, w):
    N = x.shape[0]
    return pl.pallas_call(
        _matmul_kernel,
        out_shape=jax.ShapeDtypeStruct((N, w.shape[1]), jnp.bfloat16),
        in_specs=[_VMEM] * 2,
        out_specs=_VMEM,
    )(x.astype(jnp.bfloat16), w)


def gcn_aggregate(A, hw, b):
    N = A.shape[0]
    TM = _row_tile(N)
    Np = _round_up(N, TM)
    A_p = jnp.pad(A, ((0, Np - N), (0, Np - N))).astype(jnp.bfloat16)
    hw_p = jnp.pad(hw, ((0, Np - N), (0, 0)))
    out = pl.pallas_call(
        _gcn_agg_kernel,
        out_shape=jax.ShapeDtypeStruct((Np, 128), jnp.bfloat16),
        grid=(Np // TM,),
        in_specs=[
            pl.BlockSpec((TM, Np), lambda i: (i, 0)),    # A row tile
            pl.BlockSpec((Np, 128), lambda i: (0, 0)),   # XW (full)
            pl.BlockSpec((1, 128), lambda i: (0, 0)),    # bias
        ],
        out_specs=pl.BlockSpec((TM, 128), lambda i: (i, 0)),
        compiler_params=pltpu.CompilerParams(dimension_semantics=("parallel",)),
    )(A_p, hw_p, b)
    return out[:N]


def gat_attention(hg, conn, a_src, a_dst, b):
    N = hg.shape[0]
    TM = _row_tile(N)
    Np = _round_up(N, TM)
    hg_p = jnp.pad(hg, ((0, Np - N), (0, 0)))
    conn_p = jnp.pad(conn.astype(jnp.bfloat16), ((0, Np - N), (0, Np - N)))
    asrc = jnp.pad(a_src, (0, Np - N)).reshape(1, Np).astype(jnp.float32)
    adst = jnp.pad(a_dst, (0, Np - N)).reshape(Np, 1).astype(jnp.float32)
    out = pl.pallas_call(
        _gat_attn_kernel,
        out_shape=jax.ShapeDtypeStruct((Np, 128), jnp.bfloat16),
        grid=(Np // TM,),
        in_specs=[
            pl.BlockSpec((Np, 128), lambda i: (0, 0)),   # Wx (full, for alpha @ Wx)
            pl.BlockSpec((TM, Np), lambda i: (i, 0)),    # connectivity row tile
            pl.BlockSpec((1, Np), lambda i: (0, 0)),     # per-source att scores
            pl.BlockSpec((TM, 1), lambda i: (i, 0)),     # per-dst att scores (tile)
            pl.BlockSpec((1, 128), lambda i: (0, 0)),    # bias
        ],
        out_specs=pl.BlockSpec((TM, 128), lambda i: (i, 0)),
        compiler_params=pltpu.CompilerParams(dimension_semantics=("parallel",)),
    )(hg_p, conn_p, asrc, adst, b)
    return out[:N]


def head(y, p):
    B = y.shape[0]
    out = pl.pallas_call(
        _head_kernel,
        out_shape=jax.ShapeDtypeStruct((B, 128), jnp.float32),
        in_specs=[_VMEM] * 7,
        out_specs=_VMEM,
    )(y.astype(jnp.bfloat16), p["lin1_w"], p["lin1_b"], p["lin2_w"], p["lin2_b"],
      p["lin3_w"], p["lin3_b"])
    return out[:, :4]


# ----------------------------------------------------------------------------
# Deterministic parameter init (shapes from Net.__init__) + TPU-friendly prep.
# ----------------------------------------------------------------------------
def _linear_params(key, fan_in, fan_out):
    k1, k2 = jax.random.split(key)
    bound = 1.0 / math.sqrt(fan_in)
    w = jax.random.uniform(k1, (fan_in, fan_out), jnp.float32, -bound, bound)
    b = jax.random.uniform(k2, (fan_out,), jnp.float32, -bound, bound)
    return w, b


def init_params(key):
    keys = jax.random.split(key, 13)
    p = {}
    p["dec1_w"], p["dec1_b"] = _linear_params(keys[0], 79, 64)
    p["dec2_w"], p["dec2_b"] = _linear_params(keys[1], 64, 1)
    p["line_w"], p["line_b"] = _linear_params(keys[2], 1, 128)   # GINE nn
    p["gine_eps"] = 0.0
    p["pool1_w"] = jax.random.uniform(keys[3], (1,), jnp.float32, -1.0, 1.0)
    p["gcn_w"], _ = _linear_params(keys[4], 128, 128)
    p["gcn_b"] = jnp.zeros((128,), jnp.float32)
    p["pool2_w"] = jax.random.uniform(keys[5], (128,), jnp.float32, -0.1, 0.1)
    p["gat_w"], _ = _linear_params(keys[6], 128, 128)
    p["gat_att_src"] = jax.random.uniform(keys[7], (128,), jnp.float32, -0.1, 0.1)
    p["gat_att_dst"] = jax.random.uniform(keys[8], (128,), jnp.float32, -0.1, 0.1)
    p["gat_b"] = jnp.zeros((128,), jnp.float32)
    p["pool3_w"] = jax.random.uniform(keys[9], (128,), jnp.float32, -0.1, 0.1)
    p["lin1_w"], p["lin1_b"] = _linear_params(keys[10], 256, 512)
    p["lin2_w"], p["lin2_b"] = _linear_params(keys[11], 512, 128)
    p["lin3_w"], p["lin3_b"] = _linear_params(keys[12], 128, 4)
    return p


def prepare_params(p):
    """bf16 matmul weights (ragged dims zero-padded to 128), f32 biases as [1, C]."""
    q = {}
    q["dec1_w"] = jnp.pad(p["dec1_w"], ((0, 128 - 79), (0, 0))).astype(jnp.bfloat16)
    q["dec1_b"] = p["dec1_b"].reshape(1, -1)
    q["dec2_w"] = p["dec2_w"].astype(jnp.bfloat16)
    q["dec2_b"] = p["dec2_b"].reshape(1, -1)
    q["line_w"] = p["line_w"].reshape(1, 128)
    q["line_b"] = p["line_b"].reshape(1, -1)
    q["gine_eps"] = jnp.float32(p["gine_eps"])
    q["pool1_w"] = p["pool1_w"]
    q["gcn_w"] = p["gcn_w"].astype(jnp.bfloat16)
    q["gcn_b"] = p["gcn_b"].reshape(1, -1)
    q["pool2_w"] = p["pool2_w"]
    q["gat_w"] = p["gat_w"].astype(jnp.bfloat16)
    q["gat_att_src"] = p["gat_att_src"]
    q["gat_att_dst"] = p["gat_att_dst"]
    q["gat_b"] = p["gat_b"].reshape(1, -1)
    q["pool3_w"] = p["pool3_w"]
    q["lin1_w"] = p["lin1_w"].astype(jnp.bfloat16)
    q["lin1_b"] = p["lin1_b"].reshape(1, -1)
    q["lin2_w"] = p["lin2_w"].astype(jnp.bfloat16)
    q["lin2_b"] = p["lin2_b"].reshape(1, -1)
    q["lin3_w"] = jnp.pad(p["lin3_w"], ((0, 0), (0, 128 - 4))).astype(jnp.bfloat16)
    q["lin3_b"] = jnp.pad(p["lin3_b"], (0, 128 - 4)).reshape(1, -1)
    return q


# ----------------------------------------------------------------------------
# Batched graph glue (mask-based TopKPooling, global max/mean pool) — plain JAX.
# ----------------------------------------------------------------------------
def topk_pool(x, weight, node_mask, batch_idx, num_graphs, ratio=0.8):
    # TODO(synk): per-graph top-k selection is data-dependent; kept in JAX but fully
    # vectorized over graphs (within-graph rank), no Python per-graph loops.
    wn = jnp.linalg.norm(weight)
    score = jnp.tanh(jnp.sum(x.astype(jnp.float32) * weight[None, :], axis=-1) / wn)
    score_m = jnp.where(node_mask, score, jnp.float32(-1e30))
    N = x.shape[0]
    idx = jnp.arange(N, dtype=jnp.int32)
    same_graph = batch_idx[:, None] == batch_idx[None, :]
    higher = (score_m[None, :] > score_m[:, None]) | (
        (score_m[None, :] == score_m[:, None]) & (idx[None, :] < idx[:, None]))
    rank = jnp.sum(same_graph & higher, axis=1)
    valid_cnt = jax.ops.segment_sum(node_mask.astype(jnp.float32), batch_idx,
                                    num_segments=num_graphs)
    k = jnp.ceil(ratio * valid_cnt).astype(jnp.int32)
    keep = node_mask & (rank < k[batch_idx])
    x_new = jnp.where(keep[:, None], x.astype(jnp.float32) * score[:, None], 0.0)
    return x_new.astype(x.dtype), keep


def global_pools(x, node_mask, batch_idx, num_graphs):
    xf = x.astype(jnp.float32)
    m = node_mask[:, None]
    gm = jax.ops.segment_max(jnp.where(m, xf, jnp.float32(-1e30)), batch_idx,
                             num_segments=num_graphs)                         # gmp
    s = jax.ops.segment_sum(jnp.where(m, xf, 0.0), batch_idx, num_segments=num_graphs)
    cnt = jax.ops.segment_sum(node_mask.astype(jnp.float32), batch_idx,
                              num_segments=num_graphs)
    ga = s / cnt[:, None]                                                     # gap
    return jnp.concatenate([gm, ga], axis=1)                                  # [B, 2C]


# ----------------------------------------------------------------------------
# Forward pass (mirrors Net.forward).
# ----------------------------------------------------------------------------
def net_forward(params, x, edge_index, edge_attr, batch_idx, num_graphs):
    N = x.shape[0]
    src, dst = edge_index[0], edge_index[1]

    # edge MLP: relu(dec1) -> relu(dec2), fused in one Pallas kernel
    e = edge_mlp(edge_attr, params)                                           # [E,1] f32

    # GINEConv: msg = relu(x_j + e_ij), sum aggregate, then nn (Pallas)
    # TODO(synk): edge gather + scatter-add aggregation stays in JAX (segment_sum).
    msg = jnp.maximum(x[src] + e, 0.0)
    aggr = jax.ops.segment_sum(msg, dst, num_segments=N)
    h = (1.0 + params["gine_eps"]) * x + aggr
    xh = gine_nn(h, params)                                                   # [N,128] bf16

    node_mask = jnp.ones((N,), bool)
    edge_mask = jnp.ones((src.shape[0],), bool)

    # pool1 + readout 1
    xh, node_mask = topk_pool(xh, params["pool1_w"], node_mask, batch_idx, num_graphs)
    edge_mask = edge_mask & node_mask[src] & node_mask[dst]
    x1 = global_pools(xh, node_mask, batch_idx, num_graphs)

    # GCNConv: X@W in Pallas, then row-tiled relu(A @ XW + b) in Pallas
    hw = matmul_128(xh, params["gcn_w"])
    ef = edge_mask.astype(jnp.float32)
    deg = 1.0 + jax.ops.segment_sum(ef, dst, num_segments=N)                  # self-loop + in-edges
    dis = jax.lax.rsqrt(deg)
    norm = dis[src] * dis[dst] * ef
    # TODO(synk): dense normalized adjacency built via JAX scatter-add; for large graphs
    # this should become sparse in-kernel aggregation via scalar-prefetched edge indices.
    A = jnp.zeros((N, N), jnp.float32).at[dst, src].add(norm) + jnp.diag(dis * dis)
    xh = gcn_aggregate(A, hw, params["gcn_b"])
    xh = xh * node_mask[:, None].astype(xh.dtype)                             # masked nodes stay 0

    # pool2 + readout 2
    xh, node_mask = topk_pool(xh, params["pool2_w"], node_mask, batch_idx, num_graphs)
    edge_mask = edge_mask & node_mask[src] & node_mask[dst]
    x2 = global_pools(xh, node_mask, batch_idx, num_graphs)

    # GATConv (1 head): W x in Pallas; fused leaky_relu/mask/softmax/aggregate in Pallas
    hg = matmul_128(xh, params["gat_w"])
    hg32 = hg.astype(jnp.float32)
    a_src = hg32 @ params["gat_att_src"]
    a_dst = hg32 @ params["gat_att_dst"]
    conn = jnp.zeros((N, N), jnp.float32).at[dst, src].add(edge_mask.astype(jnp.float32)) > 0
    conn = conn | jnp.eye(N, dtype=bool)                                      # self-loops
    xh = gat_attention(hg, conn, a_src, a_dst, params["gat_b"])
    xh = xh * node_mask[:, None].astype(xh.dtype)

    # pool3 + readout 3
    xh, node_mask = topk_pool(xh, params["pool3_w"], node_mask, batch_idx, num_graphs)
    x3 = global_pools(xh, node_mask, batch_idx, num_graphs)

    # fused head: lin1 -> relu -> dropout(id) -> lin2 -> relu -> lin3 -> log_softmax
    y = x1 + x2 + x3                                                          # [B,256] f32
    return head(y, params)                                                    # [B,4]


# ----------------------------------------------------------------------------
if __name__ == "__main__":
    key = jax.random.PRNGKey(0)
    kx, ke, kp = jax.random.split(key, 3)

    graph_sizes = (10, 10)                 # 2 graphs, 10 nodes each
    N = sum(graph_sizes)

    # bidirectional ring edges inside each graph + node->graph batch vector
    src_list, dst_list, batch_list, off = [], [], [], 0
    for g, n in enumerate(graph_sizes):
        for i in range(n):
            a, b = off + i, off + (i + 1) % n
            src_list += [a, b]
            dst_list += [b, a]
        batch_list += [g] * n
        off += n
    edge_index = jnp.array([src_list, dst_list], dtype=jnp.int32)
    batch_idx = jnp.array(batch_list, dtype=jnp.int32)
    E = edge_index.shape[1]

    x = jax.random.normal(kx, (N, 1), jnp.float32)
    edge_attr = jax.random.normal(ke, (E, 79), jnp.float32)
    params = prepare_params(init_params(kp))

    fwd = jax.jit(net_forward, static_argnames=("num_graphs",))
    out = fwd(params, x, edge_index, edge_attr, batch_idx, num_graphs=len(graph_sizes))
    out = jax.block_until_ready(out)

    assert out.shape == (len(graph_sizes), 4)
    assert bool(jnp.all(jnp.isfinite(out)))
    print("KERNEL_OK")
</pallas_src>

<mosaic_0001>
module attributes {stable_mosaic.version = 11 : i64} {
  func.func private @main(%arg0: i32) attributes {dimension_semantics = [#tpu.dimension_semantics<core_parallel>], iteration_bounds = array<i64: 2>, tpu.core_type = #tpu.core_type<sc_scalar_subcore>, window_params = []} {
    return
  }
}

module attributes {stable_mosaic.version = 11 : i64} {
  func.func private @main(%arg0: i32) attributes {dimension_semantics = [#tpu.dimension_semantics<core_parallel>], iteration_bounds = array<i64: 2>, tpu.core_type = #tpu.core_type<sc_scalar_subcore>, window_params = []} {
    return
  }
}

module attributes {stable_mosaic.version = 11 : i64} {
  func.func @_edge_mlp_kernel(%arg0: memref<40x128xbf16, #tpu.memory_space<vmem>>, %arg1: memref<128x64xbf16, #tpu.memory_space<vmem>>, %arg2: memref<1x64xf32, #tpu.memory_space<vmem>>, %arg3: memref<64x1xbf16, #tpu.memory_space<vmem>>, %arg4: memref<1x1xf32, #tpu.memory_space<vmem>>, %arg5: memref<40x1xf32, #tpu.memory_space<vmem>>) attributes {dimension_semantics = [], scalar_prefetch = 0 : i64, scratch_operands = 0 : i64, tpu.core_type = #tpu.core_type<tc>} {
    %c0 = arith.constant 0 : index
    %c0_0 = arith.constant 0 : index
    %0 = vector.load %arg0[%c0, %c0_0] : memref<40x128xbf16, #tpu.memory_space<vmem>>, vector<40x128xbf16>
    %c0_1 = arith.constant 0 : index
    %c0_2 = arith.constant 0 : index
    %1 = vector.load %arg1[%c0_1, %c0_2] : memref<128x64xbf16, #tpu.memory_space<vmem>>, vector<128x64xbf16>
    %cst = arith.constant dense<0.000000e+00> : vector<40x64xf32>
    %2 = tpu.matmul %0, %1, %cst {dimension_numbers = #tpu.dot_dimension_numbers<[1], [0], [0], [1], [0, 0, 1, 1], [], []>} : vector<40x128xbf16>, vector<128x64xbf16>, vector<40x64xf32> -> vector<40x64xf32>
    %c0_3 = arith.constant 0 : index
    %c0_4 = arith.constant 0 : index
    %3 = vector.load %arg2[%c0_3, %c0_4] : memref<1x64xf32, #tpu.memory_space<vmem>>, vector<1x64xf32>
    %4 = vector.broadcast %3 : vector<1x64xf32> to vector<40x64xf32>
    %5 = arith.addf %2, %4 : vector<40x64xf32>
    %cst_5 = arith.constant 0.000000e+00 : f32
    %6 = vector.broadcast %cst_5 : f32 to vector<40x64xf32>
    %7 = arith.maximumf %5, %6 : vector<40x64xf32>
    %8 = arith.truncf %7 : vector<40x64xf32> to vector<40x64xbf16>
    %c0_6 = arith.constant 0 : index
    %c0_7 = arith.constant 0 : index
    %9 = vector.load %arg3[%c0_6, %c0_7] : memref<64x1xbf16, #tpu.memory_space<vmem>>, vector<64x1xbf16>
    %cst_8 = arith.constant dense<0.000000e+00> : vector<40x1xf32>
    %10 = tpu.matmul %8, %9, %cst_8 {dimension_numbers = #tpu.dot_dimension_numbers<[1], [0], [0], [1], [0, 0, 1, 1], [], []>} : vector<40x64xbf16>, vector<64x1xbf16>, vector<40x1xf32> -> vector<40x1xf32>
    %c0_9 = arith.constant 0 : index
    %c0_10 = arith.constant 0 : index
    %11 = vector.load %arg4[%c0_9, %c0_10] : memref<1x1xf32, #tpu.memory_space<vmem>>, vector<1x1xf32>
    %12 = vector.broadcast %11 : vector<1x1xf32> to vector<40x1xf32>
    %13 = arith.addf %10, %12 : vector<40x1xf32>
    %cst_11 = arith.constant 0.000000e+00 : f32
    %14 = vector.broadcast %cst_11 : f32 to vector<40x1xf32>
    %15 = arith.maximumf %13, %14 : vector<40x1xf32>
    %c0_12 = arith.constant 0 : index
    %c0_13 = arith.constant 0 : index
    %16 = vector.load %arg5[%c0_12, %c0_13] : memref<40x1xf32, #tpu.memory_space<vmem>>, vector<40x1xf32>
    tpu.vector_store %arg5[%c0_12, %c0_13], %15 {strides = array<i32>} : memref<40x1xf32, #tpu.memory_space<vmem>>, vector<40x1xf32>,
    return
  }
}

module attributes {stable_mosaic.version = 11 : i64} {
  func.func @_gine_nn_kernel(%arg0: memref<20x1xf32, #tpu.memory_space<vmem>>, %arg1: memref<1x128xf32, #tpu.memory_space<vmem>>, %arg2: memref<1x128xf32, #tpu.memory_space<vmem>>, %arg3: memref<20x128xbf16, #tpu.memory_space<vmem>>) attributes {dimension_semantics = [], scalar_prefetch = 0 : i64, scratch_operands = 0 : i64, tpu.core_type = #tpu.core_type<tc>} {
    %c0 = arith.constant 0 : index
    %c0_0 = arith.constant 0 : index
    %0 = vector.load %arg0[%c0, %c0_0] : memref<20x1xf32, #tpu.memory_space<vmem>>, vector<20x1xf32>
    %c0_1 = arith.constant 0 : index
    %c0_2 = arith.constant 0 : index
    %1 = vector.load %arg1[%c0_1, %c0_2] : memref<1x128xf32, #tpu.memory_space<vmem>>, vector<1x128xf32>
    %2 = vector.broadcast %0 : vector<20x1xf32> to vector<20x128xf32>
    %3 = vector.broadcast %1 : vector<1x128xf32> to vector<20x128xf32>
    %4 = arith.mulf %2, %3 : vector<20x128xf32>
    %c0_3 = arith.constant 0 : index
    %c0_4 = arith.constant 0 : index
    %5 = vector.load %arg2[%c0_3, %c0_4] : memref<1x128xf32, #tpu.memory_space<vmem>>, vector<1x128xf32>
    %6 = vector.broadcast %5 : vector<1x128xf32> to vector<20x128xf32>
    %7 = arith.addf %4, %6 : vector<20x128xf32>
    %cst = arith.constant 0.000000e+00 : f32
    %8 = vector.broadcast %cst : f32 to vector<20x128xf32>
    %9 = arith.maximumf %7, %8 : vector<20x128xf32>
    %10 = arith.truncf %9 : vector<20x128xf32> to vector<20x128xbf16>
    %c0_5 = arith.constant 0 : index
    %c0_6 = arith.constant 0 : index
    %11 = vector.load %arg3[%c0_5, %c0_6] : memref<20x128xbf16, #tpu.memory_space<vmem>>, vector<20x128xbf16>
    tpu.vector_store %arg3[%c0_5, %c0_6], %10 {strides = array<i32>} : memref<20x128xbf16, #tpu.memory_space<vmem>>, vector<20x128xbf16>,
    return
  }
}

module attributes {stable_mosaic.version = 11 : i64} {
  func.func @_matmul_kernel(%arg0: memref<20x128xbf16, #tpu.memory_space<vmem>>, %arg1: memref<128x128xbf16, #tpu.memory_space<vmem>>, %arg2: memref<20x128xbf16, #tpu.memory_space<vmem>>) attributes {dimension_semantics = [], scalar_prefetch = 0 : i64, scratch_operands = 0 : i64, tpu.core_type = #tpu.core_type<tc>} {
    %c0 = arith.constant 0 : index
    %c0_0 = arith.constant 0 : index
    %0 = vector.load %arg0[%c0, %c0_0] : memref<20x128xbf16, #tpu.memory_space<vmem>>, vector<20x128xbf16>
    %c0_1 = arith.constant 0 : index
    %c0_2 = arith.constant 0 : index
    %1 = vector.load %arg1[%c0_1, %c0_2] : memref<128x128xbf16, #tpu.memory_space<vmem>>, vector<128x128xbf16>
    %cst = arith.constant dense<0.000000e+00> : vector<20x128xf32>
    %2 = tpu.matmul %0, %1, %cst {dimension_numbers = #tpu.dot_dimension_numbers<[1], [0], [0], [1], [0, 0, 1, 1], [], []>} : vector<20x128xbf16>, vector<128x128xbf16>, vector<20x128xf32> -> vector<20x128xf32>
    %3 = arith.truncf %2 : vector<20x128xf32> to vector<20x128xbf16>
    %c0_3 = arith.constant 0 : index
    %c0_4 = arith.constant 0 : index
    %4 = vector.load %arg2[%c0_3, %c0_4] : memref<20x128xbf16, #tpu.memory_space<vmem>>, vector<20x128xbf16>
    tpu.vector_store %arg2[%c0_3, %c0_4], %3 {strides = array<i32>} : memref<20x128xbf16, #tpu.memory_space<vmem>>, vector<20x128xbf16>,
    return
  }
}

module attributes {stable_mosaic.version = 11 : i64} {
  func.func @_gcn_agg_kernel(%arg0: i32, %arg1: memref<8x24xbf16, #tpu.memory_space<vmem>>, %arg2: memref<24x128xbf16, #tpu.memory_space<vmem>>, %arg3: memref<1x128xf32, #tpu.memory_space<vmem>>, %arg4: memref<8x128xbf16, #tpu.memory_space<vmem>>) attributes {dimension_semantics = [#tpu.dimension_semantics<parallel>], iteration_bounds = array<i64: 3>, scalar_prefetch = 0 : i64, scratch_operands = 0 : i64, tpu.core_type = #tpu.core_type<tc>, window_params = [{transform_indices = @transform_0, window_bounds = array<i64: 8, 24>}, {pipeline_mode = #tpu.pipeline_mode<synchronous>, transform_indices = @transform_1, window_bounds = array<i64: 24, 128>}, {pipeline_mode = #tpu.pipeline_mode<synchronous>, transform_indices = @transform_2, window_bounds = array<i64: 1, 128>}, {transform_indices = @transform_3, window_bounds = array<i64: 8, 128>}]} {
    %c0 = arith.constant 0 : index
    %c0_0 = arith.constant 0 : index
    %0 = vector.load %arg1[%c0, %c0_0] : memref<8x24xbf16, #tpu.memory_space<vmem>>, vector<8x24xbf16>
    %c0_1 = arith.constant 0 : index
    %c0_2 = arith.constant 0 : index
    %1 = vector.load %arg2[%c0_1, %c0_2] : memref<24x128xbf16, #tpu.memory_space<vmem>>, vector<24x128xbf16>
    %cst = arith.constant dense<0.000000e+00> : vector<8x128xf32>
    %2 = tpu.matmul %0, %1, %cst {dimension_numbers = #tpu.dot_dimension_numbers<[1], [0], [0], [1], [0, 0, 1, 1], [], []>} : vector<8x24xbf16>, vector<24x128xbf16>, vector<8x128xf32> -> vector<8x128xf32>
    %c0_3 = arith.constant 0 : index
    %c0_4 = arith.constant 0 : index
    %3 = vector.load %arg3[%c0_3, %c0_4] : memref<1x128xf32, #tpu.memory_space<vmem>>, vector<1x128xf32>
    %4 = vector.broadcast %3 : vector<1x128xf32> to vector<8x128xf32>
    %5 = arith.addf %2, %4 : vector<8x128xf32>
    %cst_5 = arith.constant 0.000000e+00 : f32
    %6 = vector.broadcast %cst_5 : f32 to vector<8x128xf32>
    %7 = arith.maximumf %5, %6 : vector<8x128xf32>
    %8 = arith.truncf %7 : vector<8x128xf32> to vector<8x128xbf16>
    %c0_6 = arith.constant 0 : index
    %c0_7 = arith.constant 0 : index
    %9 = vector.load %arg4[%c0_6, %c0_7] : memref<8x128xbf16, #tpu.memory_space<vmem>>, vector<8x128xbf16>
    tpu.vector_store %arg4[%c0_6, %c0_7], %8 {strides = array<i32>} : memref<8x128xbf16, #tpu.memory_space<vmem>>, vector<8x128xbf16>,
    return
  }
  func.func @transform_0(%arg0: i32) -> (i32, i32) {
    %c0_i32 = arith.constant 0 : i32
    %c0_i32_0 = arith.constant 0 : i32
    return %arg0, %c0_i32 : i32, i32
  }
  func.func @transform_1(%arg0: i32) -> (i32, i32) {
    %c0_i32 = arith.constant 0 : i32
    %c0_i32_0 = arith.constant 0 : i32
    %c0_i32_1 = arith.constant 0 : i32
    return %c0_i32, %c0_i32_0 : i32, i32
  }
  func.func @transform_2(%arg0: i32) -> (i32, i32) {
    %c0_i32 = arith.constant 0 : i32
    %c0_i32_0 = arith.constant 0 : i32
    %c0_i32_1 = arith.constant 0 : i32
    return %c0_i32, %c0_i32_0 : i32, i32
  }
  func.func @transform_3(%arg0: i32) -> (i32, i32) {
    %c0_i32 = arith.constant 0 : i32
    %c0_i32_0 = arith.constant 0 : i32
    return %arg0, %c0_i32 : i32, i32
  }
}

module attributes {stable_mosaic.version = 11 : i64} {
  func.func @_head_kernel(%arg0: memref<2x256xbf16, #tpu.memory_space<vmem>>, %arg1: memref<256x512xbf16, #tpu.memory_space<vmem>>, %arg2: memref<1x512xf32, #tpu.memory_space<vmem>>, %arg3: memref<512x128xbf16, #tpu.memory_space<vmem>>, %arg4: memref<1x128xf32, #tpu.memory_space<vmem>>, %arg5: memref<128x128xbf16, #tpu.memory_space<vmem>>, %arg6: memref<1x128xf32, #tpu.memory_space<vmem>>, %arg7: memref<2x128xf32, #tpu.memory_space<vmem>>) attributes {dimension_semantics = [], scalar_prefetch = 0 : i64, scratch_operands = 0 : i64, tpu.core_type = #tpu.core_type<tc>} {
    %c0 = arith.constant 0 : index
    %c0_0 = arith.constant 0 : index
    %0 = vector.load %arg0[%c0, %c0_0] : memref<2x256xbf16, #tpu.memory_space<vmem>>, vector<2x256xbf16>
    %c0_1 = arith.constant 0 : index
    %c0_2 = arith.constant 0 : index
    %1 = vector.load %arg1[%c0_1, %c0_2] : memref<256x512xbf16, #tpu.memory_space<vmem>>, vector<256x512xbf16>
    %cst = arith.constant dense<0.000000e+00> : vector<2x512xf32>
    %2 = tpu.matmul %0, %1, %cst {dimension_numbers = #tpu.dot_dimension_numbers<[1], [0], [0], [1], [0, 0, 1, 1], [], []>} : vector<2x256xbf16>, vector<256x512xbf16>, vector<2x512xf32> -> vector<2x512xf32>
    %c0_3 = arith.constant 0 : index
    %c0_4 = arith.constant 0 : index
    %3 = vector.load %arg2[%c0_3, %c0_4] : memref<1x512xf32, #tpu.memory_space<vmem>>, vector<1x512xf32>
    %4 = vector.broadcast %3 : vector<1x512xf32> to vector<2x512xf32>
    %5 = arith.addf %2, %4 : vector<2x512xf32>
    %cst_5 = arith.constant 0.000000e+00 : f32
    %6 = vector.broadcast %cst_5 : f32 to vector<2x512xf32>
    %7 = arith.maximumf %5, %6 : vector<2x512xf32>
    %8 = arith.truncf %7 : vector<2x512xf32> to vector<2x512xbf16>
    %c0_6 = arith.constant 0 : index
    %c0_7 = arith.constant 0 : index
    %9 = vector.load %arg3[%c0_6, %c0_7] : memref<512x128xbf16, #tpu.memory_space<vmem>>, vector<512x128xbf16>
    %cst_8 = arith.constant dense<0.000000e+00> : vector<2x128xf32>
    %10 = tpu.matmul %8, %9, %cst_8 {dimension_numbers = #tpu.dot_dimension_numbers<[1], [0], [0], [1], [0, 0, 1, 1], [], []>} : vector<2x512xbf16>, vector<512x128xbf16>, vector<2x128xf32> -> vector<2x128xf32>
    %c0_9 = arith.constant 0 : index
    %c0_10 = arith.constant 0 : index
    %11 = vector.load %arg4[%c0_9, %c0_10] : memref<1x128xf32, #tpu.memory_space<vmem>>, vector<1x128xf32>
    %12 = vector.broadcast %11 : vector<1x128xf32> to vector<2x128xf32>
    %13 = arith.addf %10, %12 : vector<2x128xf32>
    %cst_11 = arith.constant 0.000000e+00 : f32
    %14 = vector.broadcast %cst_11 : f32 to vector<2x128xf32>
    %15 = arith.maximumf %13, %14 : vector<2x128xf32>
    %16 = arith.truncf %15 : vector<2x128xf32> to vector<2x128xbf16>
    %c0_12 = arith.constant 0 : index
    %c0_13 = arith.constant 0 : index
    %17 = vector.load %arg5[%c0_12, %c0_13] : memref<128x128xbf16, #tpu.memory_space<vmem>>, vector<128x128xbf16>
    %cst_14 = arith.constant dense<0.000000e+00> : vector<2x128xf32>
    %18 = tpu.matmul %16, %17, %cst_14 {dimension_numbers = #tpu.dot_dimension_numbers<[1], [0], [0], [1], [0, 0, 1, 1], [], []>} : vector<2x128xbf16>, vector<128x128xbf16>, vector<2x128xf32> -> vector<2x128xf32>
    %c0_15 = arith.constant 0 : index
    %c0_16 = arith.constant 0 : index
    %19 = vector.load %arg6[%c0_15, %c0_16] : memref<1x128xf32, #tpu.memory_space<vmem>>, vector<1x128xf32>
    %20 = vector.broadcast %19 : vector<1x128xf32> to vector<2x128xf32>
    %21 = arith.addf %18, %20 : vector<2x128xf32>
    %22 = tpu.iota {dimensions = array<i32: 1>} : vector<2x128xi32>
    %c4_i32 = arith.constant 4 : i32
    %23 = vector.broadcast %c4_i32 : i32 to vector<2x128xi32>
    %24 = arith.cmpi slt, %22, %23 : vector<2x128xi32>
    %cst_17 = arith.constant -1.000000e+30 : f32
    %25 = vector.broadcast %cst_17 : f32 to vector<2x128xf32>
    %26 = arith.select %24, %21, %25 : vector<2x128xi1>, vector<2x128xf32>
    %cst_18 = arith.constant dense<0xFF800000> : vector<2xf32>
    %27 = vector.multi_reduction <maximumf>, %26, %cst_18 [1] : vector<2x128xf32> to vector<2xf32>
    %28 = vector.shape_cast %27 : vector<2xf32> to vector<2x1xf32>
    %29 = vector.broadcast %28 : vector<2x1xf32> to vector<2x128xf32>
    %30 = arith.subf %26, %29 : vector<2x128xf32>
    %31 = math.exp %30 : vector<2x128xf32>
    %cst_19 = arith.constant 0.000000e+00 : f32
    %32 = vector.broadcast %cst_19 : f32 to vector<2x128xf32>
    %33 = arith.select %24, %31, %32 : vector<2x128xi1>, vector<2x128xf32>
    %cst_20 = arith.constant dense<0.000000e+00> : vector<2xf32>
    %34 = vector.multi_reduction <add>, %33, %cst_20 [1] : vector<2x128xf32> to vector<2xf32>
    %35 = vector.shape_cast %34 : vector<2xf32> to vector<2x1xf32>
    %36 = math.log %35 : vector<2x1xf32>
    %37 = vector.broadcast %36 : vector<2x1xf32> to vector<2x128xf32>
    %38 = arith.subf %30, %37 : vector<2x128xf32>
    %cst_21 = arith.constant 0.000000e+00 : f32
    %39 = vector.broadcast %cst_21 : f32 to vector<2x128xf32>
    %40 = arith.select %24, %38, %39 : vector<2x128xi1>, vector<2x128xf32>
    %c0_22 = arith.constant 0 : index
    %c0_23 = arith.constant 0 : index
    %41 = vector.load %arg7[%c0_22, %c0_23] : memref<2x128xf32, #tpu.memory_space<vmem>>, vector<2x128xf32>
    tpu.vector_store %arg7[%c0_22, %c0_23], %40 {strides = array<i32>} : memref<2x128xf32, #tpu.memory_space<vmem>>, vector<2x128xf32>,
    return
  }
}

module attributes {stable_mosaic.version = 11 : i64} {
  func.func @_gat_attn_kernel(%arg0: i32, %arg1: memref<24x128xbf16, #tpu.memory_space<vmem>>, %arg2: memref<8x24xbf16, #tpu.memory_space<vmem>>, %arg3: memref<1x24xf32, #tpu.memory_space<vmem>>, %arg4: memref<8x1xf32, #tpu.memory_space<vmem>>, %arg5: memref<1x128xf32, #tpu.memory_space<vmem>>, %arg6: memref<8x128xbf16, #tpu.memory_space<vmem>>) attributes {dimension_semantics = [#tpu.dimension_semantics<parallel>], iteration_bounds = array<i64: 3>, scalar_prefetch = 0 : i64, scratch_operands = 0 : i64, tpu.core_type = #tpu.core_type<tc>, window_params = [{pipeline_mode = #tpu.pipeline_mode<synchronous>, transform_indices = @transform_0, window_bounds = array<i64: 24, 128>}, {transform_indices = @transform_1, window_bounds = array<i64: 8, 24>}, {pipeline_mode = #tpu.pipeline_mode<synchronous>, transform_indices = @transform_2, window_bounds = array<i64: 1, 24>}, {transform_indices = @transform_3, window_bounds = array<i64: 8, 1>}, {pipeline_mode = #tpu.pipeline_mode<synchronous>, transform_indices = @transform_4, window_bounds = array<i64: 1, 128>}, {transform_indices = @transform_5, window_bounds = array<i64: 8, 128>}]} {
    %c0 = arith.constant 0 : index
    %c0_0 = arith.constant 0 : index
    %0 = vector.load %arg4[%c0, %c0_0] : memref<8x1xf32, #tpu.memory_space<vmem>>, vector<8x1xf32>
    %c0_1 = arith.constant 0 : index
    %c0_2 = arith.constant 0 : index
    %1 = vector.load %arg3[%c0_1, %c0_2] : memref<1x24xf32, #tpu.memory_space<vmem>>, vector<1x24xf32>
    %2 = vector.broadcast %0 : vector<8x1xf32> to vector<8x24xf32>
    %3 = vector.broadcast %1 : vector<1x24xf32> to vector<8x24xf32>
    %4 = arith.addf %2, %3 : vector<8x24xf32>
    %cst = arith.constant 0.000000e+00 : f32
    %5 = vector.broadcast %cst : f32 to vector<8x24xf32>
    %6 = arith.cmpf ogt, %4, %5 : vector<8x24xf32>
    %cst_3 = arith.constant 2.000000e-01 : f32
    %7 = vector.broadcast %cst_3 : f32 to vector<8x24xf32>
    %8 = arith.mulf %7, %4 : vector<8x24xf32>
    %9 = arith.select %6, %4, %8 : vector<8x24xi1>, vector<8x24xf32>
    %c0_4 = arith.constant 0 : index
    %c0_5 = arith.constant 0 : index
    %10 = vector.load %arg2[%c0_4, %c0_5] : memref<8x24xbf16, #tpu.memory_space<vmem>>, vector<8x24xbf16>
    %11 = arith.extf %10 : vector<8x24xbf16> to vector<8x24xf32>
    %cst_6 = arith.constant 5.000000e-01 : f32
    %12 = vector.broadcast %cst_6 : f32 to vector<8x24xf32>
    %13 = arith.cmpf ogt, %11, %12 : vector<8x24xf32>
    %cst_7 = arith.constant -1.000000e+30 : f32
    %14 = vector.broadcast %cst_7 : f32 to vector<8x24xf32>
    %15 = arith.select %13, %9, %14 : vector<8x24xi1>, vector<8x24xf32>
    %cst_8 = arith.constant dense<0xFF800000> : vector<8xf32>
    %16 = vector.multi_reduction <maximumf>, %15, %cst_8 [1] : vector<8x24xf32> to vector<8xf32>
    %17 = vector.shape_cast %16 : vector<8xf32> to vector<8x1xf32>
    %18 = vector.broadcast %17 : vector<8x1xf32> to vector<8x24xf32>
    %19 = arith.subf %15, %18 : vector<8x24xf32>
    %20 = math.exp %19 : vector<8x24xf32>
    %cst_9 = arith.constant dense<0.000000e+00> : vector<8xf32>
    %21 = vector.multi_reduction <add>, %20, %cst_9 [1] : vector<8x24xf32> to vector<8xf32>
    %22 = vector.shape_cast %21 : vector<8xf32> to vector<8x1xf32>
    %23 = tpu.reciprocal %22 {approx = true} : vector<8x1xf32> -> vector<8x1xf32>
    %24 = vector.broadcast %23 : vector<8x1xf32> to vector<8x24xf32>
    %25 = arith.mulf %20, %24 : vector<8x24xf32>
    %26 = arith.truncf %25 : vector<8x24xf32> to vector<8x24xbf16>
    %c0_10 = arith.constant 0 : index
    %c0_11 = arith.constant 0 : index
    %27 = vector.load %arg1[%c0_10, %c0_11] : memref<24x128xbf16, #tpu.memory_space<vmem>>, vector<24x128xbf16>
    %cst_12 = arith.constant dense<0.000000e+00> : vector<8x128xf32>
    %28 = tpu.matmul %26, %27, %cst_12 {dimension_numbers = #tpu.dot_dimension_numbers<[1], [0], [0], [1], [0, 0, 1, 1], [], []>} : vector<8x24xbf16>, vector<24x128xbf16>, vector<8x128xf32> -> vector<8x128xf32>
    %c0_13 = arith.constant 0 : index
    %c0_14 = arith.constant 0 : index
    %29 = vector.load %arg5[%c0_13, %c0_14] : memref<1x128xf32, #tpu.memory_space<vmem>>, vector<1x128xf32>
    %30 = vector.broadcast %29 : vector<1x128xf32> to vector<8x128xf32>
    %31 = arith.addf %28, %30 : vector<8x128xf32>
    %cst_15 = arith.constant 0.000000e+00 : f32
    %32 = vector.broadcast %cst_15 : f32 to vector<8x128xf32>
    %33 = arith.maximumf %31, %32 : vector<8x128xf32>
    %34 = arith.truncf %33 : vector<8x128xf32> to vector<8x128xbf16>
    %c0_16 = arith.constant 0 : index
    %c0_17 = arith.constant 0 : index
    %35 = vector.load %arg6[%c0_16, %c0_17] : memref<8x128xbf16, #tpu.memory_space<vmem>>, vector<8x128xbf16>
    tpu.vector_store %arg6[%c0_16, %c0_17], %34 {strides = array<i32>} : memref<8x128xbf16, #tpu.memory_space<vmem>>, vector<8x128xbf16>,
    return
  }
  func.func @transform_0(%arg0: i32) -> (i32, i32) {
    %c0_i32 = arith.constant 0 : i32
    %c0_i32_0 = arith.constant 0 : i32
    %c0_i32_1 = arith.constant 0 : i32
    return %c0_i32, %c0_i32_0 : i32, i32
  }
  func.func @transform_1(%arg0: i32) -> (i32, i32) {
    %c0_i32 = arith.constant 0 : i32
    %c0_i32_0 = arith.constant 0 : i32
    return %arg0, %c0_i32 : i32, i32
  }
  func.func @transform_2(%arg0: i32) -> (i32, i32) {
    %c0_i32 = arith.constant 0 : i32
    %c0_i32_0 = arith.constant 0 : i32
    %c0_i32_1 = arith.constant 0 : i32
    return %c0_i32, %c0_i32_0 : i32, i32
  }
  func.func @transform_3(%arg0: i32) -> (i32, i32) {
    %c0_i32 = arith.constant 0 : i32
    %c0_i32_0 = arith.constant 0 : i32
    return %arg0, %c0_i32 : i32, i32
  }
  func.func @transform_4(%arg0: i32) -> (i32, i32) {
    %c0_i32 = arith.constant 0 : i32
    %c0_i32_0 = arith.constant 0 : i32
    %c0_i32_1 = arith.constant 0 : i32
    return %c0_i32, %c0_i32_0 : i32, i32
  }
  func.func @transform_5(%arg0: i32) -> (i32, i32) {
    %c0_i32 = arith.constant 0 : i32
    %c0_i32_0 = arith.constant 0 : i32
    return %arg0, %c0_i32 : i32, i32
  }
}

</mosaic_0001>

<bundles_post_ra>
// kernel: net_forward.7
= control target key start
LH: loop header
LB: loop body
LE: loop exit
PB: predicated region body
PF: predicated region fallthrough
CT: control target
= control target key end

     0   :  { %v402_v0 = vmov 0.0   ;;  %vm403_vm0 = vmmov 0   ;;  %vm218_vm1 = vcmask 523264   ;;  %vm289_vm2 = vcmask 7168   ;;  %s532_s1 = inlined_call_operand.vmem [shape: bf16[128,64], index: 1, kind: input, shape index: {}]   ;;  %s533_s0 = inlined_call_operand.vmem [shape: bf16[40,128], index: 0, kind: input, shape index: {}]   ;;  %s534_s3 = inlined_call_operand.vmem [shape: bf16[64,1], index: 3, kind: input, shape index: {}]   ;;  %s535_s4 = inlined_call_operand.<no memory space> [shape: f32[1,1], index: 4, kind: input, shape index: {}]   ;;  %s536_s2 = inlined_call_operand.vmem [shape: f32[1,64], index: 2, kind: input, shape index: {}]   ;;  %s537_s5 = inlined_call_operand.vmem [shape: f32[40,1], index: 5, kind: output, shape index: {}]  }
   0x1   :  { %337 = vmatprep.subr.bf16.mxu0 %v402_v0  ;;  %v387_v1 = vld [vmem:[%s532_s1 + $0x38] sm:$0xff]   ;;  %353 = vmatprep.mubr.msk.bf16.mxu0 %vm403_vm0, %v402_v0  ;;  %v388_v2 = vld [vmem:[%s532_s1 + $0x30] sm:$0xff]   ;;  %v389_v3 = vld [vmem:[%s532_s1 + $0x28] sm:$0xff]   ;;  %v10_v16 = vstv %s535_s4 }
   0x2   :  { %365 = vmatprep.subr.bf16.mxu1 %v402_v0  ;;  %373 = vmatprep.mubr.msk.bf16.mxu1 %vm403_vm0, %v402_v0  ;;  %v390_v4 = vld [vmem:[%s532_s1 + $0x20] sm:$0xff]   ;;  %v398_v5 = vld [vmem:[%s534_s3 + $0x18] sm:$0xff]   ;;  %v392_v7 = vld [vmem:[%s532_s1 + $0x10] sm:$0xff]   ;;  %11 = vst [vmem:[#allocation2] sm:$0x1] %v10_v16 }
   0x3   :  { %338 = vmatpush3.bf16.msra.mxu0 %v387_v1  ;;  %366 = vmatpush3.bf16.msra.mxu1 %v398_v5  ;;  %v391_v6 = vld [vmem:[%s532_s1 + $0x18] sm:$0xff]   ;;  %v393_v8 = vld [vmem:[%s532_s1 + $0x8] sm:$0xff]   ;;  %v394_v9 = vld [vmem:[%s532_s1] sm:$0xff]  }
   0x4   :  { %339 = vmatprep.subr.bf16.mxu0 %v402_v0  ;;  %367 = vmatprep.subr.bf16.mxu1 %v402_v0  ;;  %v395_v10 = vld [vmem:[%s533_s0] sm:$0xff]   ;;  %v396_v11 = vld [vmem:[%s533_s0 + $0x8] sm:$0xff]   ;;  %v397_v12 = vld [vmem:[%s533_s0 + $0x10] ss:$0 sps:$4 sm:$0xff]  }
   0x5   :  { %v399_v13 = vld [vmem:[%s534_s3 + $0x10] sm:$0xff]   ;;  %v400_v14 = vld [vmem:[%s534_s3 + $0x8] sm:$0xff]   ;;  %v401_v15 = vld [vmem:[%s534_s3] sm:$0xff]  }
   0x6   :  { %v299_v17 = vld [vmem:[%s536_s2] ss:$0 sm:$0xff] }
   0x7   :  { %340 = vmatpush3.bf16.msra.mxu0 %v388_v2  ;;  %368 = vmatpush3.bf16.msra.mxu1 %v399_v13 }
   0x8   :  { %341 = vmatprep.subr.bf16.mxu0 %v402_v0  ;;  %369 = vmatprep.subr.bf16.mxu1 %v402_v0 }
   0x9   :  { %v311_v43 = vld [vmem:[#allocation2] ss:$0 sm:$0xff] }
   0xb   :  { %342 = vmatpush3.bf16.msra.mxu0 %v389_v3  ;;  %370 = vmatpush3.bf16.msra.mxu1 %v400_v14 }
   0xc   :  { %343 = vmatprep.subr.bf16.mxu0 %v402_v0  ;;  %371 = vmatprep.subr.bf16.mxu1 %v402_v0 }
   0xf   :  { %344 = vmatpush3.bf16.msra.mxu0 %v390_v4  ;;  %372 = vmatpush3.bf16.msra.mxu1 %v401_v15 }
  0x10   :  { %345 = vmatprep.subr.bf16.mxu0 %v402_v0 }
  0x13   :  { %346 = vmatpush3.bf16.msra.mxu0 %v391_v6 }
  0x14   :  { %347 = vmatprep.subr.bf16.mxu0 %v402_v0 }
  0x17   :  { %348 = vmatpush3.bf16.msra.mxu0 %v392_v7 }
  0x18   :  { %349 = vmatprep.subr.bf16.mxu0 %v402_v0 }
  0x1b   :  { %350 = vmatpush3.bf16.msra.mxu0 %v393_v8 }
  0x1c   :  { %351 = vmatprep.subr.bf16.mxu0 %v402_v0 }
  0x1f   :  { %352 = vmatpush3.bf16.msra.mxu0 %v394_v9 }
  0x22   :  { %354 = vmatmul.mubr.bf16.vlgmr.msra.gmra.mxu0 %v395_v10 }
  0x23   :  { %357 = vmatprep.mubr.msk.bf16.mxu0 %vm403_vm0, %v402_v0 }
  0x2a   :  { %358 = vmatmul.mubr.bf16.gmra.mxu0 %v396_v11 }
  0x2b   :  { %361 = vmatprep.mubr.msk.bf16.mxu0 %vm403_vm0, %v402_v0 }
  0x32   :  { %362 = vmatmul.mubr.bf16.gmra.mxu0 %v397_v12 }
  0xe2   :  { %v149_v18 = vpop.f32.mrf.mxu0 }
  0xe3   :  { %v150_v20 = vadd.f32 %v299_v17, %v149_v18 }
  0xe4   :  { %v355_v19 = vpop.f32.mrf.mxu0 }
  0xe5   :  { %v171_v24 = vmax.f32 %v150_v20, 0.0 }
  0xe6   :  { %v152_v21 = vpop.f32.mrf.mxu0 }
  0xe7   :  { %v153_v22 = vadd.f32 %v299_v17, %v152_v21 }
  0xe8   :  { %v356_v23 = vpop.f32.mrf.mxu0 }
  0xe9   :  { %v172_v25 = vmax.f32 %v153_v22, 0.0 }
  0xea   :  { %v157_v26 = vpop.f32.mrf.mxu0 }
  0xeb   :  { %v176_v27 = vpack.c.bf16 %v172_v25, %v171_v24  ;;  %v158_v29 = vadd.f32 %v299_v17, %v157_v26 }
  0xec   :  { %v359_v28 = vpop.f32.mrf.mxu0 }
  0xed   :  { %374 = vmatmul.mubr.msk.bf16.vlgmr.msra.gmra.mxu1 %vm218_vm1, %v176_v27  ;;  %v173_v33 = vmax.f32 %v158_v29, 0.0 }
  0xee   :  { %v160_v30 = vpop.f32.mrf.mxu0  ;;  %377 = vmatprep.mubr.msk.bf16.mxu1 %vm403_vm0, %v402_v0 }
  0xef   :  { %v161_v31 = vadd.f32 %v299_v17, %v160_v30 }
  0xf0   :  { %v360_v32 = vpop.f32.mrf.mxu0 }
  0xf1   :  { %v174_v34 = vmax.f32 %v161_v31, 0.0 }
  0xf2   :  { %v165_v35 = vpop.f32.mrf.mxu0 }
  0xf3   :  { %v177_v36 = vpack.c.bf16 %v174_v34, %v173_v33  ;;  %v166_v37 = vadd.f32 %v299_v17, %v165_v35 }
  0xf4   :  { %v363_v38 = vpop.f32.mrf.mxu0 }
  0xf5   :  { %v175_v39 = vmax.f32 %v166_v37, 0.0  ;;  %378 = vmatmul.mubr.msk.bf16.gmra.mxu1 %vm218_vm1, %v177_v36 }
  0xf6   :  { %v168_v40 = vpop.f32.mrf.mxu0  ;;  %381 = vmatprep.mubr.msk.bf16.mxu1 %vm403_vm0, %v402_v0 }
  0xf7   :  { %v178_v42 = vpack.c.bf16 %v175_v39, %v175_v39 }
  0xf8   :  { %v364_v41 = vpop.f32.mrf.mxu0 }
  0xfd   :  { %382 = vmatmul.mubr.msk.bf16.gmra.mxu1 %vm218_vm1, %v178_v42 }
 0x1ad   :  { %v262_v44 = vpop.f32.mrf.mxu1 }
 0x1ae   :  { %v263_v45 = vadd.f32 %v311_v43, %v262_v44 }
 0x1af   :  { %v375_v46 = vpop.f32.mrf.mxu1 }
 0x1b0   :  { %v284_v47 = vmax.f32 %v263_v45, 0.0 }
 0x1b1   :  { %v265_v48 = vpop.f32.mrf.mxu1 }
 0x1b2   :  { %290 = vst.msk [vmem:[%s537_s5] sm:$0xff] %vm289_vm2, %v284_v47  ;;  %v266_v49 = vadd.f32 %v311_v43, %v265_v48 }
 0x1b3   :  { %v376_v50 = vpop.f32.mrf.mxu1 }
 0x1b4   :  { %v285_v51 = vmax.f32 %v266_v49, 0.0 }
 0x1b5   :  { %v270_v52 = vpop.f32.mrf.mxu1 }
 0x1b6   :  { %291 = vst.msk [vmem:[%s537_s5 + $0x8] sm:$0xff] %vm289_vm2, %v285_v51  ;;  %v271_v53 = vadd.f32 %v311_v43, %v270_v52 }
 0x1b7   :  { %v379_v54 = vpop.f32.mrf.mxu1 }
 0x1b8   :  { %v286_v55 = vmax.f32 %v271_v53, 0.0 }
 0x1b9   :  { %v273_v56 = vpop.f32.mrf.mxu1 }
 0x1ba   :  { %292 = vst.msk [vmem:[%s537_s5 + $0x10] sm:$0xff] %vm289_vm2, %v286_v55  ;;  %v274_v57 = vadd.f32 %v311_v43, %v273_v56 }
 0x1bb   :  { %v380_v58 = vpop.f32.mrf.mxu1 }
 0x1bc   :  { %v287_v59 = vmax.f32 %v274_v57, 0.0 }
 0x1bd   :  { %v278_v60 = vpop.f32.mrf.mxu1 }
 0x1be   :  { %293 = vst.msk [vmem:[%s537_s5 + $0x18] sm:$0xff] %vm289_vm2, %v287_v59  ;;  %v279_v61 = vadd.f32 %v311_v43, %v278_v60 }
 0x1bf   :  { %v383_v62 = vpop.f32.mrf.mxu1 }
 0x1c0   :  { %v288_v63 = vmax.f32 %v279_v61, 0.0 }
 0x1c1   :  { %v281_v0 = vpop.f32.mrf.mxu1 }
 0x1c2   :  { %294 = vst.msk [vmem:[%s537_s5 + $0x20] sm:$0xff] %vm289_vm2, %v288_v63 }
 0x1c3   :  { %v384_v1 = vpop.f32.mrf.mxu1 }

// kernel: net_forward.8
= control target key start
LH: loop header
LB: loop body
LE: loop exit
PB: predicated region body
PF: predicated region fallthrough
CT: control target
= control target key end

     0   :  { %v91_v0 = vmov 0   ;;  %s133_s0 = inlined_call_operand.vmem [shape: f32[20,1], index: 0, kind: input, shape index: {}]   ;;  %s134_s1 = inlined_call_operand.vmem [shape: f32[1,128], index: 1, kind: input, shape index: {}]   ;;  %s135_s2 = inlined_call_operand.vmem [shape: f32[1,128], index: 2, kind: input, shape index: {}]   ;;  %s136_s3 = inlined_call_operand.vmem [shape: bf16[20,128], index: 3, kind: output, shape index: {}]  }
   0x1   :  { %89 = vset.pattern.permute.xlu0 %v91_v0  ;;  %v14_v1 = vld [vmem:[%s133_s0] sm:$0xff]  ;;  %90 = vset.pattern.permute.xlu1 %v91_v0  ;;  %v16_v2 = vld [vmem:[%s133_s0 + $0x10] sm:$0xf]  ;;  %v15_v3 = vld [vmem:[%s133_s0 + $0x8] sm:$0xff] }
   0x2   :  { %20 = vperm.xlu0 %89, %v14_v1   ;;  %30 = vperm.xlu1 %90, %v16_v2   ;;  %v75_v4 = vld [vmem:[%s134_s1] ss:$0 sm:$0xff] }
   0x3   :  { %v76_v9 = vld [vmem:[%s135_s2] ss:$0 sm:$0xff] }
   0x6   :  { %25 = vperm.xlu0 %89, %v15_v3  }
  0x7d   :  { %v21_v5 = vpop.permute.xlu0 %20  ;;  %v31_v6 = vpop.permute.xlu1 %30 }
  0x7e   :  { %v39_v7 = vmul.f32 %v75_v4, %v21_v5  ;;  %v41_v8 = vmul.f32 %v75_v4, %v31_v6 }
  0x80   :  { %v51_v10 = vadd.f32 %v76_v9, %v41_v8  ;;  %v49_v12 = vadd.f32 %v76_v9, %v39_v7 }
  0x81   :  { %v26_v11 = vpop.permute.xlu0 %25 }
  0x82   :  { %v54_v13 = vmax.f32 %v51_v10, 0.0  ;;  %v40_v14 = vmul.f32 %v75_v4, %v26_v11  ;;  %v52_v17 = vmax.f32 %v49_v12, 0.0 }
  0x84   :  { %v82_v15 = vpack.c.bf16 %v54_v13, %v54_v13  ;;  %v50_v16 = vadd.f32 %v76_v9, %v40_v14 }
  0x86   :  { %70 = vst [vmem:[%s136_s3 + $0x8] sm:$0x3] %v82_v15  ;;  %v53_v18 = vmax.f32 %v50_v16, 0.0 }
  0x88   :  { %v86_v19 = vpack.c.bf16 %v53_v18, %v52_v17 }
  0x8a   :  { %87 = vst [vmem:[%s136_s3] sm:$0xff] %v86_v19  }

// kernel: net_forward.9
= control target key start
LH: loop header
LB: loop body
LE: loop exit
PB: predicated region body
PF: predicated region fallthrough
CT: control target
= control target key end

     0   :  { %s269_s1 = inlined_call_operand.vmem [shape: bf16[128,128], index: 1, kind: input, shape index: {}]   ;;  %s270_s0 = inlined_call_operand.vmem [shape: bf16[20,128], index: 0, kind: input, shape index: {}]   ;;  %s271_s2 = inlined_call_operand.vmem [shape: bf16[20,128], index: 2, kind: output, shape index: {}]  }
   0x1   :  { %v208_v0 = vld [vmem:[%s269_s1 + $0x38] sm:$0xff]   ;;  %v209_v1 = vld [vmem:[%s269_s1 + $0x30] sm:$0xff]   ;;  %v210_v2 = vld [vmem:[%s269_s1 + $0x28] sm:$0xff]  }
   0x2   :  { %188 = vmatprep.subr.bf16.mxu0 %v208_v0  ;;  %v211_v3 = vld [vmem:[%s269_s1 + $0x20] sm:$0xff]   ;;  %v212_v5 = vld [vmem:[%s269_s1 + $0x18] sm:$0xff]   ;;  %v213_v6 = vld [vmem:[%s269_s1 + $0x10] sm:$0xff]  }
   0x3   :  { %189 = vmatpush3.bf16.msra.mxu0 %v208_v0  ;;  %v216_v4 = vld [vmem:[%s270_s0] sm:$0xff]   ;;  %v214_v7 = vld [vmem:[%s269_s1 + $0x8] sm:$0xff]  }
   0x4   :  { %190 = vmatprep.subr.bf16.mxu0 %v209_v1  ;;  %204 = vmatprep.mubr.bf16.mxu0 %v216_v4  ;;  %v215_v8 = vld [vmem:[%s269_s1] sm:$0xff]   ;;  %v217_v9 = vld [vmem:[%s270_s0 + $0x8] ss:$0 sps:$4 sm:$0x33]  }
   0x7   :  { %191 = vmatpush3.bf16.msra.mxu0 %v209_v1 }
   0x8   :  { %192 = vmatprep.subr.bf16.mxu0 %v210_v2 }
   0xb   :  { %193 = vmatpush3.bf16.msra.mxu0 %v210_v2 }
   0xc   :  { %194 = vmatprep.subr.bf16.mxu0 %v211_v3 }
   0xf   :  { %195 = vmatpush3.bf16.msra.mxu0 %v211_v3 }
  0x10   :  { %196 = vmatprep.subr.bf16.mxu0 %v212_v5 }
  0x13   :  { %197 = vmatpush3.bf16.msra.mxu0 %v212_v5 }
  0x14   :  { %198 = vmatprep.subr.bf16.mxu0 %v213_v6 }
  0x17   :  { %199 = vmatpush3.bf16.msra.mxu0 %v213_v6 }
  0x18   :  { %200 = vmatprep.subr.bf16.mxu0 %v214_v7 }
  0x1b   :  { %201 = vmatpush3.bf16.msra.mxu0 %v214_v7 }
  0x1c   :  { %202 = vmatprep.subr.bf16.mxu0 %v215_v8 }
  0x1f   :  { %203 = vmatpush3.bf16.msra.mxu0 %v215_v8 }
  0x22   :  { %205 = vmatmul.mubr.bf16.vlgmr.msra.gmra.mxu0 %v217_v9 }
  0xe2   :  { %v206_v10 = vpop.f32.mrf.mxu0 }
  0xe3   :  { %v172_v11 = vpack.c.bf16 %v206_v10, %v206_v10 }
  0xe4   :  { %v123_v12 = vpop.f32.mrf.mxu0 }
  0xe5   :  { %152 = vst [vmem:[%s271_s2 + $0x8] sm:$0x3] %v172_v11 }
  0xe6   :  { %v207_v13 = vpop.f32.mrf.mxu0 }
  0xe8   :  { %v126_v14 = vpop.f32.mrf.mxu0 }
  0xe9   :  { %v176_v15 = vpack.c.bf16 %v126_v14, %v123_v12 }
  0xeb   :  { %177 = vst [vmem:[%s271_s2] sm:$0xff] %v176_v15  }

// kernel: net_forward.10
= control target key start
LH: loop header
LB: loop body
LE: loop exit
PB: predicated region body
PF: predicated region fallthrough
CT: control target
= control target key end

     0   :  { %s357_s12 = smov 0   ;;  %s383_s0 = inlined_call_operand.vmem [shape: bf16[24,24], index: 0, kind: input, shape index: {}]   ;;  %s384_s1 = inlined_call_operand.vmem [shape: bf16[24,128], index: 1, kind: input, shape index: {}]   ;;  %s385_s2 = inlined_call_operand.vmem [shape: f32[1,128], index: 2, kind: input, shape index: {}]   ;;  %s386_s3 = inlined_call_operand.vmem [shape: bf16[24,128], index: 3, kind: output, shape index: {}]  }
   0x1 LB: > { %s291_s13 = sadd.s32 4294967295, %s333_s12   ;;  %p295_p0 = scmp.ge.s32.totalorder %s333_s12, 1  ;;  %s333_s12 = sphi %s357_s12, %s13_s12  }
   0x2   : > { %p136_p1 = scmp.lt.s32.totalorder %s333_s12, 4 }
   0x4   : > { %p137_p2 = pnand %p295_p0, %p136_p1 }
   0x5   : > { %p158_p3 = scmp.lt.s32.totalorder (!%p137_p2), %s291_s13, 2 }
   0x6   : > { %140 = sbr.rel (%p137_p2) target bundleno = 220 (0xdc), region = 32 }
   0xb   : > { %v325_v0 = vld [vmem:[%s384_s1 + $0x8] ss:$0 sps:$4 sm:$0xff]   ;;  %vm191_vm0 = vcmask 1043456   ;;  %v335_v1 = vmov 0.0   ;;  %vm336_vm1 = vmmov 0   ;;  %v326_v3 = vld [vmem:[%s384_s1] sm:$0xff]  }
   0xc   : > { %307 = vmatprep.subr.bf16.mxu0 %v335_v1  ;;  %v193_v2 = vsel %vm191_vm0, %v325_v0, 0  ;;  %311 = vmatprep.mubr.msk.bf16.mxu0 %vm336_vm1, %v335_v1  ;;  %s388_s13 = smov (!%p158_p3, %s291_s13), 2  ;;  %vm187_vm2 = vcmask 195584   ;;  %v298_v5 = vld [vmem:[%s385_s2] ss:$0 sm:$0xff] }
   0xd   : > { %308 = vmatpush3.bf16.msra.mxu0 %v193_v2  ;;  %s296_s18 = sshll.u32 %s388_s13, 2 }
   0xe   : > { %309 = vmatprep.subr.bf16.mxu0 %v335_v1  ;;  %s161_s21 = scalar_lea.vmem %s383_s0, %s296_s18  ;;  %s165_s26 = scalar_lea.vmem %s386_s3, %s296_s18 }
   0xf   : > { %v167_v4 = vld [vmem:[%s161_s21] sm:$0xf] }
  0x11   : > { %310 = vmatpush3.bf16.msra.mxu0 %v326_v3 }
  0x14   : > { %312 = vmatmul.mubr.msk.bf16.vlgmr.msra.gmra.mxu0 %vm187_vm2, %v167_v4 }
  0xd4   : > { %v229_v6 = vpop.f32.mrf.mxu0 }
  0xd5   : > { %v230_v7 = vadd.f32 %v298_v5, %v229_v6 }
  0xd6   : > { %v313_v8 = vpop.f32.mrf.mxu0 }
  0xd7   : > { %v235_v9 = vmax.f32 %v230_v7, 0.0 }
  0xd8   : > { %v232_v10 = vpop.f32.mrf.mxu0 }
  0xd9   : > { %v236_v11 = vpack.c.bf16 %v235_v9, %v235_v9 }
  0xda   : > { %v314_v12 = vpop.f32.mrf.mxu0 }
  0xdb   : > { %237 = vst [vmem:[%s165_s26] sm:$0xf] %v236_v11 }
  0xdc PF: > { %s13_s12 = sadd.s32 1, %s333_s12  }
  0xdd   : > { %p10_p4 = scmp.ge.s32.totalorder %s13_s12, 5  }
  0xdf   :  { %12 = sbr.rel (!%p10_p4) target bundleno = 1 (0x1), region = 62 }

// kernel: net_forward.12
= control target key start
LH: loop header
LB: loop body
LE: loop exit
PB: predicated region body
PF: predicated region fallthrough
CT: control target
= control target key end

     0   :  { %s491_s18 = smov 0   ;;  %s534_s0 = inlined_call_operand.vmem [shape: bf16[24,128], index: 0, kind: input, shape index: {}]   ;;  %s535_s1 = inlined_call_operand.vmem [shape: bf16[24,24], index: 1, kind: input, shape index: {}]   ;;  %s536_s2 = inlined_call_operand.vmem [shape: f32[1,24], index: 2, kind: input, shape index: {}]   ;;  %s537_s3 = inlined_call_operand.vmem [shape: f32[24,1], index: 3, kind: input, shape index: {}]   ;;  %s538_s4 = inlined_call_operand.vmem [shape: f32[1,128], index: 4, kind: input, shape index: {}]   ;;  %s539_s5 = inlined_call_operand.vmem [shape: bf16[24,128], index: 5, kind: output, shape index: {}]  }
   0x1 LB: > { %s406_s19 = sadd.s32 4294967295, %s456_s18   ;;  %p410_p0 = scmp.ge.s32.totalorder %s456_s18, 1  ;;  %s456_s18 = sphi %s491_s18, %s15_s18  }
   0x2   : > { %p195_p1 = scmp.lt.s32.totalorder %s456_s18, 4 }
   0x4   : > { %p196_p2 = pnand %p410_p0, %p195_p1 }
   0x5   : > { %p225_p3 = scmp.lt.s32.totalorder (!%p196_p2), %s406_s19, 2 }
   0x6   : > { %199 = sbr.rel (%p196_p2) target bundleno = 659 (0x293), region = 40 }
   0xb   : > { %v458_v0 = vmov 0   ;;  %s541_s19 = smov (!%p225_p3, %s406_s19), 2  ;;  %v414_v3 = vld [vmem:[%s536_s2] ss:$0 sm:$0xff]  ;;  %vm259_vm2 = vcmask 195584   ;;  %vm294_vm3 = vcmask 1043456  }
   0xc   : > { %443 = vset.pattern.permute.xlu0 %v458_v0  ;;  %s412_s20 = sshll.u32 %s541_s19, 3  ;;  %s411_s24 = sshll.u32 %s541_s19, 2  ;;  %v444_v16 = vld [vmem:[%s534_s0 + $0x8] ss:$0 sps:$4 sm:$0xff]   ;;  %v459_v17 = vmov 0.0   ;;  %vm460_vm4 = vmmov 0  }
   0xd   : > { %s232_s23 = scalar_lea.vmem %s537_s3, %s412_s20  ;;  %s228_s27 = scalar_lea.vmem %s535_s1, %s411_s24  ;;  %424 = vmatprep.subr.bf16.mxu0 %v459_v17  ;;  %428 = vmatprep.mubr.msk.bf16.mxu0 %vm460_vm4, %v459_v17  ;;  %v296_v18 = vsel %vm294_vm3, %v444_v16, 0  ;;  %v445_v19 = vld [vmem:[%s534_s0] sm:$0xff]  }
   0xe   : > { %v238_v1 = vld [vmem:[%s232_s23] sm:$0xff]  ;;  %425 = vmatpush3.bf16.msra.mxu0 %v296_v18  ;;  %s236_s13 = scalar_lea.vmem %s539_s5, %s411_s24 }
   0xf   : > { %242 = vperm.xlu0 %443, %v238_v1   ;;  %v255_v2 = vld [vmem:[%s228_s27] sm:$0xf]  ;;  %426 = vmatprep.subr.bf16.mxu0 %v459_v17 }
  0x10   : > { %v256_v4 = vunpack.c.l.bf16 %v255_v2  ;;  %v415_v24 = vld [vmem:[%s538_s4] ss:$0 sm:$0xff] }
  0x12   : > { %vm257_vm1 = vcmp.gt.f32.partialorder %v256_v4, 0.5  ;;  %427 = vmatpush3.bf16.msra.mxu0 %v445_v19 }
  0x8a   : > { %v243_v5 = vpop.permute.xlu0 %242 }
  0x8b   : > { %v251_v6 = vadd.f32 %v414_v3, %v243_v5 }
  0x8d   : > { %v253_v7 = vmul.f32 0.2, %v251_v6  ;;  %vm252_vm0 = vcmp.gt.f32.partialorder %v251_v6, 0.0 }
  0x8f   : > { %v254_v8 = vsel %vm252_vm0, %v251_v6, %v253_v7 }
  0x90   : > { %v258_v9 = vsel %vm257_vm1, %v254_v8, -1e+30 }
  0x91   : > { %v260_v10 = vsel %vm259_vm2, %v258_v9, -inf }
  0x92   : > { %261 = vmax.xlane.f32.xlu0 %v260_v10 }
 0x11b   : > { %v262_v11 = vpop.xlane.xlu0 %261 }
 0x11c   : > { %v263_v12 = vsub.f32 %v258_v9, %v262_v11 }
 0x11e   : > { %v264_v13 = vmul.f32 1.442695, %v263_v12 }
 0x120   : > { %446 = vpow2.f32 %v264_v13 }
 0x12d   : > { %v447_v14 = vpop.eup %446 }
 0x12e   : > { %v266_v15 = vsel %vm259_vm2, %v447_v14, 0.0 }
 0x12f   : > { %267 = vadd.xlane.f32.xlu1 %v266_v15 }
 0x1b8   : > { %v268_v20 = vpop.xlane.xlu1 %267 }
 0x1b9   : > { %448 = vrcp.f32 %v268_v20 }
 0x1c6   : > { %v449_v21 = vpop.eup %448 }
 0x1c7   : > { %v270_v22 = vmul.f32 %v449_v21, %v447_v14 }
 0x1c9   : > { %v271_v23 = vpack.c.bf16 %v270_v22, %v270_v22 }
 0x1cb   : > { %429 = vmatmul.mubr.msk.bf16.vlgmr.msra.gmra.mxu0 %vm259_vm2, %v271_v23 }
 0x28b   : > { %v332_v25 = vpop.f32.mrf.mxu0 }
 0x28c   : > { %v333_v26 = vadd.f32 %v415_v24, %v332_v25 }
 0x28d   : > { %v430_v27 = vpop.f32.mrf.mxu0 }
 0x28e   : > { %v338_v28 = vmax.f32 %v333_v26, 0.0 }
 0x28f   : > { %v335_v29 = vpop.f32.mrf.mxu0 }
 0x290   : > { %v339_v30 = vpack.c.bf16 %v338_v28, %v338_v28 }
 0x291   : > { %v431_v31 = vpop.f32.mrf.mxu0 }
 0x292   : > { %340 = vst [vmem:[%s236_s13] sm:$0xf] %v339_v30 }
 0x293 PF: > { %s15_s18 = sadd.s32 1, %s456_s18  }
 0x294   : > { %p12_p4 = scmp.ge.s32.totalorder %s15_s18, 5  }
 0x296   :  { %14 = sbr.rel (!%p12_p4) target bundleno = 1 (0x1), region = 73 }

// kernel: net_forward.13
= control target key start
LH: loop header
LB: loop body
LE: loop exit
PB: predicated region body
PF: predicated region fallthrough
CT: control target
= control target key end

     0   :  { %v95_v38 = vlaneseq  ;;  %v1386_v39 = vmov 1966171168   ;;  %s1769_s0 = inlined_call_operand.vmem [shape: bf16[2,256], index: 0, kind: input, shape index: {}]   ;;  %s1770_s1 = inlined_call_operand.vmem [shape: bf16[256,512], index: 1, kind: input, shape index: {}]   ;;  %s1771_s2 = inlined_call_operand.vmem [shape: f32[1,512], index: 2, kind: input, shape index: {}]   ;;  %s1772_s3 = inlined_call_operand.vmem [shape: bf16[512,128], index: 3, kind: input, shape index: {}]   ;;  %s1773_s4 = inlined_call_operand.vmem [shape: f32[1,128], index: 4, kind: input, shape index: {}]   ;;  %s1774_s5 = inlined_call_operand.vmem [shape: bf16[128,128], index: 5, kind: input, shape index: {}]   ;;  %s1775_s6 = inlined_call_operand.vmem [shape: f32[1,128], index: 6, kind: input, shape index: {}]   ;;  %s1776_s7 = inlined_call_operand.hbm [shape: f32[2,128], index: 7, kind: output, shape index: {}]  }
   0x1   :  { %v1224_v0 = vld [vmem:[%s1770_s1 + $0xe4] ss:$16 sps:$4 sm:$0xff]   ;;  %v1226_v1 = vld [vmem:[%s1770_s1 + $0xec] ss:$16 sps:$4 sm:$0xff]   ;;  %v1228_v2 = vld [vmem:[%s1770_s1 + $0xe0] ss:$16 sps:$4 sm:$0xff]   ;;  %v125_v40 = vunpack.c.l.s4 %v1386_v39 }
   0x2   :  { %460 = vmatprep.subr.bf16.mxu0 %v1224_v0  ;;  %v1229_v3 = vld [vmem:[%s1770_s1 + $0xe8] ss:$16 sps:$4 sm:$0xff]   ;;  %501 = vmatprep.subr.bf16.mxu1 %v1226_v1  ;;  %v1230_v4 = vld [vmem:[%s1770_s1 + $0xc4] ss:$16 sps:$4 sm:$0xff]   ;;  %v1232_v5 = vld [vmem:[%s1770_s1 + $0xcc] ss:$16 sps:$4 sm:$0xff]  }
   0x3   :  { %461 = vmatpush1.bf16.msra.mxu0 %v1228_v2  ;;  %502 = vmatpush1.bf16.msra.mxu1 %v1229_v3  ;;  %v1234_v6 = vld [vmem:[%s1770_s1 + $0xc0] ss:$16 sps:$4 sm:$0xff]   ;;  %v1235_v7 = vld [vmem:[%s1770_s1 + $0xc8] ss:$16 sps:$4 sm:$0xff]   ;;  %v1236_v8 = vld [vmem:[%s1770_s1 + $0xa4] ss:$16 sps:$4 sm:$0xff]   ;;  %v126_v46 = vunpack.c.0.s8 %v125_v40 }
   0x4   :  { %462 = vmatprep.subr.bf16.mxu0 %v1230_v4  ;;  %503 = vmatprep.subr.bf16.mxu1 %v1232_v5  ;;  %v1238_v9 = vld [vmem:[%s1770_s1 + $0xac] ss:$16 sps:$4 sm:$0xff]   ;;  %v1240_v10 = vld [vmem:[%s1770_s1 + $0xa0] ss:$16 sps:$4 sm:$0xff]   ;;  %v1241_v11 = vld [vmem:[%s1770_s1 + $0xa8] ss:$16 sps:$4 sm:$0xff]  }
   0x5   :  { %v1242_v12 = vld [vmem:[%s1770_s1 + $0x84] ss:$16 sps:$4 sm:$0xff]   ;;  %v1244_v13 = vld [vmem:[%s1770_s1 + $0x8c] ss:$16 sps:$4 sm:$0xff]   ;;  %v1246_v14 = vld [vmem:[%s1770_s1 + $0x80] ss:$16 sps:$4 sm:$0xff]  }
   0x6   :  { %v1247_v15 = vld [vmem:[%s1770_s1 + $0x88] ss:$16 sps:$4 sm:$0xff]   ;;  %v1248_v16 = vld [vmem:[%s1770_s1 + $0x64] ss:$16 sps:$4 sm:$0xff]   ;;  %v1250_v17 = vld [vmem:[%s1770_s1 + $0x6c] ss:$16 sps:$4 sm:$0xff]  }
   0x7   :  { %463 = vmatpush1.bf16.msra.mxu0 %v1234_v6  ;;  %504 = vmatpush1.bf16.msra.mxu1 %v1235_v7  ;;  %v1252_v18 = vld [vmem:[%s1770_s1 + $0x60] ss:$16 sps:$4 sm:$0xff]   ;;  %v1253_v19 = vld [vmem:[%s1770_s1 + $0x68] ss:$16 sps:$4 sm:$0xff]   ;;  %v1254_v20 = vld [vmem:[%s1770_s1 + $0x44] ss:$16 sps:$4 sm:$0xff]  }
   0x8   :  { %464 = vmatprep.subr.bf16.mxu0 %v1236_v8  ;;  %505 = vmatprep.subr.bf16.mxu1 %v1238_v9  ;;  %v1256_v21 = vld [vmem:[%s1770_s1 + $0x4c] ss:$16 sps:$4 sm:$0xff]   ;;  %v1258_v22 = vld [vmem:[%s1770_s1 + $0x40] ss:$16 sps:$4 sm:$0xff]   ;;  %v1259_v23 = vld [vmem:[%s1770_s1 + $0x48] ss:$16 sps:$4 sm:$0xff]  }
   0x9   :  { %v1260_v24 = vld [vmem:[%s1770_s1 + $0x24] ss:$16 sps:$4 sm:$0xff]   ;;  %v1262_v25 = vld [vmem:[%s1770_s1 + $0x2c] ss:$16 sps:$4 sm:$0xff]   ;;  %v1264_v26 = vld [vmem:[%s1770_s1 + $0x20] ss:$16 sps:$4 sm:$0xff]  }
   0xa   :  { %v1265_v27 = vld [vmem:[%s1770_s1 + $0x28] ss:$16 sps:$4 sm:$0xff]   ;;  %v1266_v28 = vld [vmem:[%s1770_s1 + $0x4] ss:$16 sps:$4 sm:$0xff]   ;;  %v1268_v29 = vld [vmem:[%s1770_s1 + $0xc] ss:$16 sps:$4 sm:$0xff]  }
   0xb   :  { %465 = vmatpush1.bf16.msra.mxu0 %v1240_v10  ;;  %506 = vmatpush1.bf16.msra.mxu1 %v1241_v11  ;;  %v1270_v30 = vld [vmem:[%s1770_s1] ss:$16 sps:$4 sm:$0xff]   ;;  %v1271_v31 = vld [vmem:[%s1770_s1 + $0x8] ss:$16 sps:$4 sm:$0xff]   ;;  %v1272_v32 = vld [vmem:[%s1770_s1 + $0x1e4] ss:$16 sps:$4 sm:$0xff]  }
   0xc   :  { %466 = vmatprep.subr.bf16.mxu0 %v1242_v12  ;;  %507 = vmatprep.subr.bf16.mxu1 %v1244_v13  ;;  %v1274_v33 = vld [vmem:[%s1770_s1 + $0x1ec] ss:$16 sps:$4 sm:$0xff]   ;;  %v1276_v34 = vld [vmem:[%s1770_s1 + $0x1e0] ss:$16 sps:$4 sm:$0xff]   ;;  %v1277_v35 = vld [vmem:[%s1770_s1 + $0x1e8] ss:$16 sps:$4 sm:$0xff]  }
   0xd   :  { %v1278_v36 = vld [vmem:[%s1770_s1 + $0x1c4] ss:$16 sps:$4 sm:$0xff]   ;;  %v1280_v37 = vld [vmem:[%s1770_s1 + $0x1cc] ss:$16 sps:$4 sm:$0xff]   ;;  %v1282_v41 = vld [vmem:[%s1770_s1 + $0x1c0] ss:$16 sps:$4 sm:$0xff]  }
   0xe   :  { %v1283_v42 = vld [vmem:[%s1770_s1 + $0x1c8] ss:$16 sps:$4 sm:$0xff]   ;;  %v1284_v43 = vld [vmem:[%s1770_s1 + $0x1a4] ss:$16 sps:$4 sm:$0xff]   ;;  %v1286_v44 = vld [vmem:[%s1770_s1 + $0x1ac] ss:$16 sps:$4 sm:$0xff]  }
   0xf   :  { %467 = vmatpush1.bf16.msra.mxu0 %v1246_v14  ;;  %508 = vmatpush1.bf16.msra.mxu1 %v1247_v15  ;;  %v1557_v45 = vshrl.u32 %v95_v38, 7  ;;  %v1288_v47 = vld [vmem:[%s1770_s1 + $0x1a0] ss:$16 sps:$4 sm:$0xff]   ;;  %v1289_v48 = vld [vmem:[%s1770_s1 + $0x1a8] ss:$16 sps:$4 sm:$0xff]  }
  0x10   :  { %468 = vmatprep.subr.bf16.mxu0 %v1248_v16  ;;  %509 = vmatprep.subr.bf16.mxu1 %v1250_v17  ;;  %v1290_v49 = vld [vmem:[%s1770_s1 + $0x184] ss:$16 sps:$4 sm:$0xff]   ;;  %v1292_v50 = vld [vmem:[%s1770_s1 + $0x18c] ss:$16 sps:$4 sm:$0xff]   ;;  %v1294_v51 = vld [vmem:[%s1770_s1 + $0x180] ss:$16 sps:$4 sm:$0xff]  }
  0x11   :  { %v1295_v52 = vld [vmem:[%s1770_s1 + $0x188] ss:$16 sps:$4 sm:$0xff]   ;;  %v129_v53 = vsub.s32 %v126_v46, %v1557_v45  ;;  %v1040_v54 = vld.sshfl [vmem:[%s1769_s0] sm:$0x11 pattern:$0x75316420] }
  0x12   :  { %v1296_v55 = vld [vmem:[%s1770_s1 + $0x164] ss:$16 sps:$4 sm:$0xff]   ;;  %v123_v56 = vcombine.high %v1040_v54, %v1040_v54  ;;  %v1298_v57 = vld [vmem:[%s1770_s1 + $0x16c] ss:$16 sps:$4 sm:$0xff]   ;;  %v1300_v58 = vld [vmem:[%s1770_s1 + $0x160] ss:$16 sps:$4 sm:$0xff]  }
  0x13   :  { %469 = vmatpush1.bf16.msra.mxu0 %v1252_v18  ;;  %510 = vmatpush1.bf16.msra.mxu1 %v1253_v19  ;;  %v1301_v60 = vld [vmem:[%s1770_s1 + $0x168] ss:$16 sps:$4 sm:$0xff]   ;;  %v1302_v61 = vld [vmem:[%s1770_s1 + $0x144] ss:$16 sps:$4 sm:$0xff]   ;;  %v1304_v62 = vld [vmem:[%s1770_s1 + $0x14c] ss:$16 sps:$4 sm:$0xff]   ;;  %v130_v12 = vrot.slane %v1040_v54, %v129_v53 }
  0x14   :  { %470 = vmatprep.subr.bf16.mxu0 %v1254_v20  ;;  %511 = vmatprep.subr.bf16.mxu1 %v1256_v21  ;;  %v137_v59 = vrot.slane %v123_v56, %v129_v53  ;;  %v1306_v63 = vld [vmem:[%s1770_s1 + $0x140] ss:$16 sps:$4 sm:$0xff]   ;;  %v1307_v0 = vld [vmem:[%s1770_s1 + $0x148] ss:$16 sps:$4 sm:$0xff]   ;;  %v1308_v1 = vld [vmem:[%s1770_s1 + $0x124] ss:$16 sps:$4 sm:$0xff]  }
  0x15   :  { %v1310_v2 = vld [vmem:[%s1770_s1 + $0x12c] ss:$16 sps:$4 sm:$0xff]   ;;  %v1312_v3 = vld [vmem:[%s1770_s1 + $0x120] ss:$16 sps:$4 sm:$0xff]   ;;  %v1313_v4 = vld [vmem:[%s1770_s1 + $0x128] ss:$16 sps:$4 sm:$0xff]  }
  0x16   :  { %492 = vmatprep.mubr.bf16.mxu0 %v137_v59  ;;  %533 = vmatprep.mubr.bf16.mxu1 %v137_v59  ;;  %v1314_v5 = vld [vmem:[%s1770_s1 + $0x104] ss:$16 sps:$4 sm:$0xff]   ;;  %v1316_v6 = vld [vmem:[%s1770_s1 + $0x10c] ss:$16 sps:$4 sm:$0xff]   ;;  %v1318_v7 = vld [vmem:[%s1770_s1 + $0x100] ss:$16 sps:$4 sm:$0xff]  }
  0x17   :  { %471 = vmatpush1.bf16.msra.mxu0 %v1258_v22  ;;  %512 = vmatpush1.bf16.msra.mxu1 %v1259_v23  ;;  %v1319_v8 = vld [vmem:[%s1770_s1 + $0x108] ss:$16 sps:$4 sm:$0xff]   ;;  %v1324_v14 = vld [vmem:[%s1772_s3 + $0x70] sm:$0xff]   ;;  %v1332_v22 = vld [vmem:[%s1772_s3 + $0x60] sm:$0xff]  }
  0x18   :  { %472 = vmatprep.subr.bf16.mxu0 %v1260_v24  ;;  %513 = vmatprep.subr.bf16.mxu1 %v1262_v25  ;;  %v1320_v9 = vld [vmem:[%s1772_s3 + $0x78] sm:$0xff]   ;;  %v1325_v15 = vld [vmem:[%s1772_s3 + $0xf0] sm:$0xff]   ;;  %v1328_v18 = vld [vmem:[%s1772_s3 + $0x68] sm:$0xff]  }
  0x19   :  { %v1321_v10 = vld [vmem:[%s1772_s3 + $0xf8] sm:$0xff]   ;;  %v1326_v16 = vld [vmem:[%s1772_s3 + $0x30] sm:$0xff]   ;;  %v1329_v19 = vld [vmem:[%s1772_s3 + $0xe8] sm:$0xff]  }
  0x1a   :  { %v1322_v11 = vld [vmem:[%s1772_s3 + $0x38] sm:$0xff]   ;;  %v1327_v17 = vld [vmem:[%s1772_s3 + $0xb0] sm:$0xff]   ;;  %v1330_v20 = vld [vmem:[%s1772_s3 + $0x28] sm:$0xff]  }
  0x1b   :  { %473 = vmatpush1.bf16.msra.mxu0 %v1264_v26  ;;  %514 = vmatpush1.bf16.msra.mxu1 %v1265_v27  ;;  %v1323_v13 = vld [vmem:[%s1772_s3 + $0xb8] sm:$0xff]   ;;  %v1331_v21 = vld [vmem:[%s1772_s3 + $0xa8] sm:$0xff]   ;;  %v1333_v23 = vld [vmem:[%s1772_s3 + $0xe0] sm:$0xff]  }
  0x1c   :  { %474 = vmatprep.subr.bf16.mxu0 %v1266_v28  ;;  %515 = vmatprep.subr.bf16.mxu1 %v1268_v29  ;;  %v1334_v24 = vld [vmem:[%s1772_s3 + $0x20] sm:$0xff]   ;;  %v1336_v26 = vld [vmem:[%s1772_s3 + $0x58] sm:$0xff]  }
  0x1d   :  { %v1335_v25 = vld [vmem:[%s1772_s3 + $0xa0] sm:$0xff]   ;;  %v1337_v27 = vld [vmem:[%s1772_s3 + $0xd8] sm:$0xff]  }
  0x1f   :  { %475 = vmatpush1.bf16.msra.mxu0 %v1270_v30  ;;  %516 = vmatpush1.bf16.msra.mxu1 %v1271_v31 }
  0x20   :  { %476 = vmatprep.subr.bf16.mxu0 %v1272_v32  ;;  %517 = vmatprep.subr.bf16.mxu1 %v1274_v33 }
  0x23   :  { %477 = vmatpush2.bf16.msra.mxu0 %v1276_v34  ;;  %518 = vmatpush2.bf16.msra.mxu1 %v1277_v35 }
  0x24   :  { %478 = vmatprep.subr.bf16.mxu0 %v1278_v36  ;;  %519 = vmatprep.subr.bf16.mxu1 %v1280_v37 }
  0x27   :  { %479 = vmatpush2.bf16.msra.mxu0 %v1282_v41  ;;  %520 = vmatpush2.bf16.msra.mxu1 %v1283_v42 }
  0x28   :  { %480 = vmatprep.subr.bf16.mxu0 %v1284_v43  ;;  %521 = vmatprep.subr.bf16.mxu1 %v1286_v44 }
  0x2b   :  { %481 = vmatpush2.bf16.msra.mxu0 %v1288_v47  ;;  %522 = vmatpush2.bf16.msra.mxu1 %v1289_v48 }
  0x2c   :  { %482 = vmatprep.subr.bf16.mxu0 %v1290_v49  ;;  %523 = vmatprep.subr.bf16.mxu1 %v1292_v50 }
  0x2f   :  { %483 = vmatpush2.bf16.msra.mxu0 %v1294_v51  ;;  %524 = vmatpush2.bf16.msra.mxu1 %v1295_v52 }
  0x30   :  { %484 = vmatprep.subr.bf16.mxu0 %v1296_v55  ;;  %525 = vmatprep.subr.bf16.mxu1 %v1298_v57 }
  0x33   :  { %485 = vmatpush2.bf16.msra.mxu0 %v1300_v58  ;;  %526 = vmatpush2.bf16.msra.mxu1 %v1301_v60 }
  0x34   :  { %486 = vmatprep.subr.bf16.mxu0 %v1302_v61  ;;  %527 = vmatprep.subr.bf16.mxu1 %v1304_v62 }
  0x37   :  { %487 = vmatpush2.bf16.msra.mxu0 %v1306_v63  ;;  %528 = vmatpush2.bf16.msra.mxu1 %v1307_v0 }
  0x38   :  { %488 = vmatprep.subr.bf16.mxu0 %v1308_v1  ;;  %529 = vmatprep.subr.bf16.mxu1 %v1310_v2 }
  0x3b   :  { %489 = vmatpush2.bf16.msra.mxu0 %v1312_v3  ;;  %530 = vmatpush2.bf16.msra.mxu1 %v1313_v4 }
  0x3c   :  { %490 = vmatprep.subr.bf16.mxu0 %v1314_v5  ;;  %531 = vmatprep.subr.bf16.mxu1 %v1316_v6 }
  0x3f   :  { %491 = vmatpush2.bf16.msra.mxu0 %v1318_v7  ;;  %532 = vmatpush2.bf16.msra.mxu1 %v1319_v8 }
  0x40   :  { %1147 = vmatprep.subr.bf16.mxu0 %v1320_v9  ;;  %1169 = vmatprep.subr.bf16.mxu1 %v1321_v10 }
  0x42   :  { %493 = vmatmul.mubr.bf16.vlgmr.msra.gmra.mxu0 %v130_v12  ;;  %534 = vmatmul.mubr.bf16.vlgmr.msra.gmra.mxu1 %v130_v12 }
  0x43   :  { %1148 = vmatpush3.bf16.msra.mxu0 %v1322_v11  ;;  %1170 = vmatpush3.bf16.msra.mxu1 %v1323_v13 }
  0x44   :  { %1149 = vmatprep.subr.bf16.mxu0 %v1324_v14  ;;  %1171 = vmatprep.subr.bf16.mxu1 %v1325_v15 }
  0x47   :  { %1150 = vmatpush3.bf16.msra.mxu0 %v1326_v16  ;;  %1172 = vmatpush3.bf16.msra.mxu1 %v1327_v17 }
  0x48   :  { %1151 = vmatprep.subr.bf16.mxu0 %v1328_v18  ;;  %1173 = vmatprep.subr.bf16.mxu1 %v1329_v19 }
  0x4b   :  { %1152 = vmatpush3.bf16.msra.mxu0 %v1330_v20  ;;  %1174 = vmatpush3.bf16.msra.mxu1 %v1331_v21 }
  0x4c   :  { %1153 = vmatprep.subr.bf16.mxu0 %v1332_v22  ;;  %1175 = vmatprep.subr.bf16.mxu1 %v1333_v23 }
  0x4d   :  { %12 = vsyncpa [#allocation3], 0  ;;  %v1338_v28 = vld [vmem:[%s1772_s3 + $0x18] sm:$0xff]   ;;  %v1340_v30 = vld [vmem:[%s1772_s3 + $0x50] sm:$0xff]   ;;  %v1387_v43 = vmov 0.0   ;;  %v97_v44 = vsub.s32 0, %v1557_v45 }
  0x4e   :  { %v1339_v29 = vld [vmem:[%s1772_s3 + $0x98] sm:$0xff]   ;;  %v1341_v31 = vld [vmem:[%s1772_s3 + $0xd0] sm:$0xff]   ;;  %v1344_v34 = vld [vmem:[%s1772_s3 + $0x48] sm:$0xff]   ;;  %v105_v46 = vsub.s32 2, %v1557_v45  ;;  %v101_v48 = vsub.s32 1, %v1557_v45  ;;  %v109_v49 = vsub.s32 3, %v1557_v45 }
  0x4f   :  { %1154 = vmatpush3.bf16.msra.mxu0 %v1334_v24  ;;  %1176 = vmatpush3.bf16.msra.mxu1 %v1335_v25  ;;  %v1342_v32 = vld [vmem:[%s1772_s3 + $0x10] sm:$0xff]   ;;  %v1345_v35 = vld [vmem:[%s1772_s3 + $0xc8] sm:$0xff]   ;;  %v1348_v39 = vld [vmem:[%s1772_s3 + $0x40] sm:$0xff]   ;;  %vm1388_vm0 = vmmov 0   ;;  %vm1010_vm2 = vcmask 1041408  }
  0x50   :  { %1155 = vmatprep.subr.bf16.mxu0 %v1336_v26  ;;  %1177 = vmatprep.subr.bf16.mxu1 %v1337_v27  ;;  %v1343_v33 = vld [vmem:[%s1772_s3 + $0x90] sm:$0xff]   ;;  %v1346_v36 = vld [vmem:[%s1772_s3 + $0x8] sm:$0xff]   ;;  %v1349_v40 = vld [vmem:[%s1772_s3 + $0xc0] sm:$0xff]  }
  0x51   :  { %v1347_v37 = vld [vmem:[%s1772_s3 + $0x88] sm:$0xff]   ;;  %v1350_v41 = vld [vmem:[%s1772_s3] sm:$0xff]   ;;  %v1352_v8 = vld [vmem:[%s1774_s5 + $0x38] sm:$0xff]  }
  0x52   :  { %v1351_v42 = vld [vmem:[%s1772_s3 + $0x80] sm:$0xff]   ;;  %v1353_v10 = vld [vmem:[%s1774_s5 + $0x30] sm:$0xff]   ;;  %v1354_v11 = vld [vmem:[%s1774_s5 + $0x28] sm:$0xff]  }
  0x53   :  { %1156 = vmatpush3.bf16.msra.mxu0 %v1338_v28  ;;  %1178 = vmatpush3.bf16.msra.mxu1 %v1339_v29  ;;  %v93_v47 = vld [vmem:[%s1771_s2] sm:$0xf]  ;;  %v1356_v13 = vld [vmem:[%s1774_s5 + $0x18] sm:$0xff]   ;;  %v1357_v14 = vld [vmem:[%s1774_s5 + $0x10] sm:$0xff]  }
  0x54   :  { %1157 = vmatprep.subr.bf16.mxu0 %v1340_v30  ;;  %1179 = vmatprep.subr.bf16.mxu1 %v1341_v31  ;;  %v98_v50 = vrot.slane %v93_v47, %v97_v44  ;;  %v106_v51 = vrot.slane %v93_v47, %v105_v46  ;;  %v102_v52 = vrot.slane %v93_v47, %v101_v48  ;;  %v1355_v12 = vld [vmem:[%s1774_s5 + $0x20] sm:$0xff]   ;;  %v1358_v15 = vld [vmem:[%s1774_s5 + $0x8] sm:$0xff]  }
  0x55   :  { %v110_v53 = vrot.slane %v93_v47, %v109_v49  ;;  %v1359_v16 = vld [vmem:[%s1774_s5] sm:$0xff]  }
  0x56   :  { %v1105_v19 = vld [vmem:[%s1773_s4] ss:$0 sm:$0xff]  ;;  %s1389_s4 = smov [#allocation2]  }
  0x57   :  { %1158 = vmatpush3.bf16.msra.mxu0 %v1342_v32  ;;  %1180 = vmatpush3.bf16.msra.mxu1 %v1343_v33  ;;  %v1007_v32 = vand.u32 127, %v95_v38  ;;  %v1138_v33 = vld [vmem:[%s1775_s6] ss:$0 sm:$0xff]  ;;  %s1032_s6 = sshll.u32 %s1389_s4, 4  ;;  %s1033_s6 = int_to_ptr.vmem [resolvable:$true] %s1032_s6 }
  0x58   :  { %1159 = vmatprep.subr.bf16.mxu0 %v1344_v34  ;;  %1181 = vmatprep.subr.bf16.mxu1 %v1345_v35  ;;  %s1364_s1 = scalar_lea.vmem %s1033_s6, 32  ;;  %p1369_p1 = scmp.lt.s32.totalorder %s1033_s6, %s1033_s6 }
  0x59   :  { %vm1008_vm1 = vcmp.lt.s32.totalorder %v1007_v32, 4  ;;  %p1365_p0 = scmp.ne.s32.totalorder %s1033_s6, %s1364_s1  ;;  %p1370_p2 = scmp.lt.s32.totalorder %s1364_s1, %s1364_s1 }
  0x5b   :  { %1160 = vmatpush3.bf16.msra.mxu0 %v1346_v36  ;;  %1182 = vmatpush3.bf16.msra.mxu1 %v1347_v37  ;;  %p1371_p3 = por %p1370_p2, %p1369_p1 }
  0x5c   :  { %1161 = vmatprep.subr.bf16.mxu0 %v1348_v39  ;;  %1183 = vmatprep.subr.bf16.mxu1 %v1349_v40 }
  0x5d   :  { %p1372_p4 = pnand %p1371_p3, %p1365_p0 }
  0x5f   :  { %1162 = vmatpush3.bf16.msra.mxu0 %v1350_v41  ;;  %1184 = vmatpush3.bf16.msra.mxu1 %v1351_v42 }
  0x60   :  { %1200 = vmatprep.subr.bf16.mxu0 %v1387_v43 }
 0x102   :  { %v494_v54 = vpop.f32.mrf.mxu0  ;;  %v535_v55 = vpop.f32.mrf.mxu1 }
 0x103   :  { %v495_v56 = vadd.f32 %v494_v54, %v98_v50  ;;  %v536_v57 = vadd.f32 %v535_v55, %v106_v51 }
 0x104   :  { %v496_v58 = vpop.f32.mrf.mxu0  ;;  %v537_v59 = vpop.f32.mrf.mxu1 }
 0x105   :  { %v544_v60 = vmax.f32 %v536_v57, 0.0  ;;  %v497_v61 = vadd.f32 %v496_v58, %v102_v52  ;;  %v538_v62 = vadd.f32 %v537_v59, %v110_v53  ;;  %v542_v63 = vmax.f32 %v495_v56, 0.0 }
 0x106   :  { %v498_v0 = vpop.f32.mrf.mxu0  ;;  %v539_v1 = vpop.f32.mrf.mxu1 }
 0x107   :  { %v543_v2 = vmax.f32 %v497_v61, 0.0  ;;  %v545_v3 = vmax.f32 %v538_v62, 0.0  ;;  %v548_v4 = vpack.c.bf16 %v544_v60, %v544_v60  ;;  %v546_v9 = vpack.c.bf16 %v542_v63, %v542_v63 }
 0x108   :  { %v499_v45 = vpop.f32.mrf.mxu0  ;;  %v540_v5 = vpop.f32.mrf.mxu1 }
 0x109   :  { %v547_v6 = vpack.c.bf16 %v543_v2, %v543_v2  ;;  %v549_v7 = vpack.c.bf16 %v545_v3, %v545_v3 }
 0x10b   :  { %845 = vmatprep.mubr.bf16.mxu0 %v547_v6  ;;  %885 = vmatprep.mubr.bf16.mxu1 %v549_v7 }
 0x10c   :  { %846 = vmatmul.mubr.bf16.vlgmr.msra.gmra.mxu0 %v546_v9  ;;  %886 = vmatmul.mubr.bf16.vlgmr.msra.gmra.mxu1 %v548_v4 }
 0x10d   :  { %1201 = vmatpush3.bf16.msra.mxu0 %v1352_v8  ;;  %1216 = vmatprep.mubr.msk.bf16.mxu0 %vm1388_vm0, %v1387_v43 }
 0x10e   :  { %1202 = vmatprep.subr.bf16.mxu0 %v1387_v43 }
 0x111   :  { %1203 = vmatpush3.bf16.msra.mxu0 %v1353_v10 }
 0x112   :  { %1204 = vmatprep.subr.bf16.mxu0 %v1387_v43 }
 0x115   :  { %1205 = vmatpush3.bf16.msra.mxu0 %v1354_v11 }
 0x116   :  { %1206 = vmatprep.subr.bf16.mxu0 %v1387_v43 }
 0x119   :  { %1207 = vmatpush3.bf16.msra.mxu0 %v1355_v12 }
 0x11a   :  { %1208 = vmatprep.subr.bf16.mxu0 %v1387_v43 }
 0x11d   :  { %1209 = vmatpush3.bf16.msra.mxu0 %v1356_v13 }
 0x11e   :  { %1210 = vmatprep.subr.bf16.mxu0 %v1387_v43 }
 0x121   :  { %1211 = vmatpush3.bf16.msra.mxu0 %v1357_v14 }
 0x122   :  { %1212 = vmatprep.subr.bf16.mxu0 %v1387_v43 }
 0x125   :  { %1213 = vmatpush3.bf16.msra.mxu0 %v1358_v15 }
 0x126   :  { %1214 = vmatprep.subr.bf16.mxu0 %v1387_v43 }
 0x129   :  { %1215 = vmatpush3.bf16.msra.mxu0 %v1359_v16 }
 0x1cc   :  { %v1163_v17 = vpop.f32.mrf.mxu0  ;;  %v1185_v18 = vpop.f32.mrf.mxu1 }
 0x1ce   :  { %v1164_v20 = vpop.f32.mrf.mxu0  ;;  %v1186_v21 = vpop.f32.mrf.mxu1 }
 0x1cf   :  { %v1165_v22 = vadd.f32 %v1164_v20, %v1163_v17  ;;  %v1187_v26 = vadd.f32 %v1186_v21, %v1185_v18 }
 0x1d0   :  { %v1166_v23 = vpop.f32.mrf.mxu0  ;;  %v1188_v24 = vpop.f32.mrf.mxu1 }
 0x1d1   :  { %v848_v25 = vadd.f32 %v1165_v22, %v1105_v19 }
 0x1d2   :  { %v1167_v27 = vpop.f32.mrf.mxu0  ;;  %v1189_v28 = vpop.f32.mrf.mxu1 }
 0x1d3   :  { %v888_v29 = vadd.f32 %v1187_v26, %v848_v25 }
 0x1d5   :  { %v893_v30 = vmax.f32 %v888_v29, 0.0 }
 0x1d7   :  { %v894_v31 = vpack.c.bf16 %v893_v30, %v893_v30 }
 0x1d9   :  { %1217 = vmatmul.mubr.bf16.vlgmr.msra.gmra.mxu0 %v894_v31 }
 0x299   :  { %v1000_v34 = vpop.f32.mrf.mxu0 }
 0x29a   :  { %v1001_v35 = vadd.f32 %v1138_v33, %v1000_v34 }
 0x29b   :  { %v1218_v36 = vpop.f32.mrf.mxu0 }
 0x29c   :  { %v1009_v37 = vsel %vm1008_vm1, %v1001_v35, -1e+30 }
 0x29d   :  { %v1003_v39 = vpop.f32.mrf.mxu0  ;;  %v1011_v40 = vsel %vm1010_vm2, %v1009_v37, -inf }
 0x29e   :  { %1012 = vmax.xlane.f32.xlu0 %v1011_v40 }
 0x29f   :  { %v1219_v41 = vpop.f32.mrf.mxu0 }
 0x327   :  { %v1013_v42 = vpop.xlane.xlu0 %1012 }
 0x328   :  { %v1014_v43 = vsub.f32 %v1009_v37, %v1013_v42 }
 0x32a   :  { %v1015_v44 = vmul.f32 1.442695, %v1014_v43 }
 0x32c   :  { %1360 = vpow2.f32 %v1015_v44 }
 0x339   :  { %v1361_v38 = vpop.eup %1360 }
 0x33a   :  { %v1017_v46 = vsel %vm1008_vm1, %v1361_v38, 0.0 }
 0x33b   :  { %v1018_v47 = vsel %vm1010_vm2, %v1017_v46, 0.0 }
 0x33c   :  { %1019 = vadd.xlane.f32.xlu0 %v1018_v47 }
 0x3c5   :  { %v1020_v48 = vpop.xlane.xlu0 %1019 }
 0x3c6   :  { %1362 = vlog2.f32 %v1020_v48 }
 0x3d3   :  { %v1363_v49 = vpop.eup %1362 }
 0x3d4   :  { %v1022_v50 = vmul.f32 0.6931472, %v1363_v49 }
 0x3d6   :  { %v1023_v51 = vsub.f32 %v1014_v43, %v1022_v50 }
 0x3d8   :  { %v1024_v52 = vsel %vm1008_vm1, %v1023_v51, 0.0 }
 0x3d9   :  { %1025 = vst [vmem:[#allocation2] sm:$0x3] %v1024_v52 }
 0x3da   :  { %1375 = shalt.err (!%p1372_p4)
}
 0x3db   :  { %1035 = dma.vmem_to_hbm [thread:$0]  %s1033_s6, 32, %s1776_s7, [#allocation3]  }
 0x3dc   :  { %1384 = dma.done.wait [#allocation3], 32  }
 0x3dd   :  { %1385 = vsyncadd [#allocation3], 4294967264 }
 0x3de   :  { %1039 = vsyncpa [#allocation3], 1 }

</bundles_post_ra>
